<compile_context>
chip_gen: v7x
topology: tpu7x:2x2x1
jax: 0.10.0
libtpu: 0.0.40
codegen_flags: <defaults>
</compile_context>

<pallas_src>
import functools
import math

import jax
import jax.numpy as jnp
from jax.experimental import pallas as pl
from jax.experimental.pallas import tpu as pltpu


# ----------------------------------------------------------------------------
# Faithful translation of SelfAttention.forward(): no params, no inputs, None.
# ----------------------------------------------------------------------------
def self_attention_forward():
    """Exact semantics of the PyTorch module's forward(): returns None."""
    return None


# ----------------------------------------------------------------------------
# Fused flash-attention forward kernel (online softmax, f32 accumulators).
# ----------------------------------------------------------------------------
def _flash_attn_kernel(q_ref, k_ref, v_ref, o_ref, m_sc, l_sc, acc_sc,
                       *, sm_scale):
    kv = pl.program_id(1)

    @pl.when(kv == 0)
    def _init():
        m_sc[...] = jnp.full_like(m_sc, -jnp.inf)
        l_sc[...] = jnp.zeros_like(l_sc)
        acc_sc[...] = jnp.zeros_like(acc_sc)

    # QK^T on the MXU: bf16 inputs, f32 accumulation. Blocks are (B, tile, D).
    s = jnp.einsum('bqd,bkd->bqk', q_ref[...], k_ref[...],
                   preferred_element_type=jnp.float32) * sm_scale

    # Online softmax update, all statistics kept in f32 scratch.
    m_new = jnp.maximum(m_sc[...], s.max(-1, keepdims=True))
    alpha = jnp.exp(m_sc[...] - m_new)
    p = jnp.exp(s - m_new)
    l_sc[...] = alpha * l_sc[...] + p.sum(-1, keepdims=True)
    acc_sc[...] = alpha * acc_sc[...] + jnp.einsum(
        'bqk,bkd->bqd', p.astype(v_ref.dtype), v_ref[...],
        preferred_element_type=jnp.float32)
    m_sc[...] = m_new

    @pl.when(kv == pl.num_programs(1) - 1)
    def _finalize():
        inv_l = pl.reciprocal(l_sc[...], approx=True)
        o_ref[...] = (acc_sc[...] * inv_l).astype(o_ref.dtype)


def flash_attention(q, k, v, *, tq=128, tk=128):
    """Fused self-attention: softmax(QK^T / sqrt(D)) V, no S x S in HBM."""
    B, S, D = q.shape
    assert S % tq == 0 and S % tk == 0 and D % 128 == 0
    kernel = functools.partial(_flash_attn_kernel,
                               sm_scale=1.0 / math.sqrt(D))
    return pl.pallas_call(
        kernel,
        out_shape=jax.ShapeDtypeStruct((B, S, D), q.dtype),
        grid_spec=pltpu.PrefetchScalarGridSpec(
            num_scalar_prefetch=0,
            grid=(S // tq, S // tk),            # reduction (kv) axis last
            in_specs=[
                pl.BlockSpec((B, tq, D), lambda qi, ki: (0, qi, 0)),  # Q
                pl.BlockSpec((B, tk, D), lambda qi, ki: (0, ki, 0)),  # K
                pl.BlockSpec((B, tk, D), lambda qi, ki: (0, ki, 0)),  # V
            ],
            out_specs=pl.BlockSpec((B, tq, D), lambda qi, ki: (0, qi, 0)),
            scratch_shapes=[
                pltpu.VMEM((B, tq, 1), jnp.float32),   # running max m
                pltpu.VMEM((B, tq, 1), jnp.float32),   # running sum l
                pltpu.VMEM((B, tq, D), jnp.float32),   # output accumulator
            ],
        ),
        compiler_params=pltpu.CompilerParams(
            dimension_semantics=("parallel", "arbitrary")),
    )(q, k, v)


# ----------------------------------------------------------------------------
# Pure-JAX reference (f32) for correctness checking.
# ----------------------------------------------------------------------------
def _attention_ref(q, k, v):
    qf, kf, vf = (x.astype(jnp.float32) for x in (q, k, v))
    s = jnp.einsum('bqd,bkd->bqk', qf, kf) / math.sqrt(q.shape[-1])
    p = jax.nn.softmax(s, axis=-1)
    return jnp.einsum('bqk,bkd->bqd', p, vf)


if __name__ == "__main__":
    # Faithful forward of the source module: no inputs, returns None.
    assert self_attention_forward() is None

    # Small, lane-dense demo shapes: batch=2, seq=256, head_dim=128.
    key = jax.random.PRNGKey(0)
    kq, kk, kv_ = jax.random.split(key, 3)
    B, S, D = 2, 256, 128
    q = jax.random.normal(kq, (B, S, D), dtype=jnp.bfloat16)
    k = jax.random.normal(kk, (B, S, D), dtype=jnp.bfloat16)
    v = jax.random.normal(kv_, (B, S, D), dtype=jnp.bfloat16)

    y = flash_attention(q, k, v)
    jax.block_until_ready(y)

    y_ref = _attention_ref(q, k, v)
    err = jnp.max(jnp.abs(y.astype(jnp.float32) - y_ref))
    if not bool(err < 3e-2):
        raise AssertionError(f"flash attention mismatch, max abs err = {err}")

    print("KERNEL_OK")
</pallas_src>

<mosaic_0001>
module attributes {stable_mosaic.version = 11 : i64} {
  func.func @_flash_attn_kernel(%arg0: i32, %arg1: i32, %arg2: memref<2x128x128xbf16, #tpu.memory_space<vmem>>, %arg3: memref<2x128x128xbf16, #tpu.memory_space<vmem>>, %arg4: memref<2x128x128xbf16, #tpu.memory_space<vmem>>, %arg5: memref<2x128x128xbf16, #tpu.memory_space<vmem>>, %arg6: memref<2x128x1xf32, #tpu.memory_space<vmem>>, %arg7: memref<2x128x1xf32, #tpu.memory_space<vmem>>, %arg8: memref<2x128x128xf32, #tpu.memory_space<vmem>>) attributes {dimension_semantics = [#tpu.dimension_semantics<parallel>, #tpu.dimension_semantics<arbitrary>], iteration_bounds = array<i64: 2, 2>, scalar_prefetch = 0 : i64, scratch_operands = 3 : i64, tpu.core_type = #tpu.core_type<tc>, window_params = [{transform_indices = @transform_0, window_bounds = array<i64: 2, 128, 128>}, {transform_indices = @transform_1, window_bounds = array<i64: 2, 128, 128>}, {transform_indices = @transform_2, window_bounds = array<i64: 2, 128, 128>}, {transform_indices = @transform_3, window_bounds = array<i64: 2, 128, 128>}]} {
    %c0_i32 = arith.constant 0 : i32
    %0 = arith.cmpi eq, %arg1, %c0_i32 : i32
    %1 = arith.extui %0 : i1 to i32
    %c0_i32_0 = arith.constant 0 : i32
    %2 = arith.cmpi ne, %1, %c0_i32_0 : i32
    scf.if %2 {
      %cst_35 = arith.constant 0xFF800000 : f32
      %36 = vector.broadcast %cst_35 : f32 to vector<2x128x1xf32>
      %c0_36 = arith.constant 0 : index
      %c0_37 = arith.constant 0 : index
      %c0_38 = arith.constant 0 : index
      %37 = vector.load %arg6[%c0_36, %c0_37, %c0_38] : memref<2x128x1xf32, #tpu.memory_space<vmem>>, vector<2x128x1xf32>
      tpu.vector_store %arg6[%c0_36, %c0_37, %c0_38], %36 {strides = array<i32>} : memref<2x128x1xf32, #tpu.memory_space<vmem>>, vector<2x128x1xf32>,
      %cst_39 = arith.constant 0.000000e+00 : f32
      %38 = vector.broadcast %cst_39 : f32 to vector<2x128x1xf32>
      %c0_40 = arith.constant 0 : index
      %c0_41 = arith.constant 0 : index
      %c0_42 = arith.constant 0 : index
      %39 = vector.load %arg7[%c0_40, %c0_41, %c0_42] : memref<2x128x1xf32, #tpu.memory_space<vmem>>, vector<2x128x1xf32>
      tpu.vector_store %arg7[%c0_40, %c0_41, %c0_42], %38 {strides = array<i32>} : memref<2x128x1xf32, #tpu.memory_space<vmem>>, vector<2x128x1xf32>,
      %cst_43 = arith.constant 0.000000e+00 : f32
      %40 = vector.broadcast %cst_43 : f32 to vector<2x128x128xf32>
      %c0_44 = arith.constant 0 : index
      %c0_45 = arith.constant 0 : index
      %c0_46 = arith.constant 0 : index
      %41 = vector.load %arg8[%c0_44, %c0_45, %c0_46] : memref<2x128x128xf32, #tpu.memory_space<vmem>>, vector<2x128x128xf32>
      tpu.vector_store %arg8[%c0_44, %c0_45, %c0_46], %40 {strides = array<i32>} : memref<2x128x128xf32, #tpu.memory_space<vmem>>, vector<2x128x128xf32>,
    } else {
    }
    %c0 = arith.constant 0 : index
    %c0_1 = arith.constant 0 : index
    %c0_2 = arith.constant 0 : index
    %3 = vector.load %arg2[%c0, %c0_1, %c0_2] : memref<2x128x128xbf16, #tpu.memory_space<vmem>>, vector<2x128x128xbf16>
    %c0_3 = arith.constant 0 : index
    %c0_4 = arith.constant 0 : index
    %c0_5 = arith.constant 0 : index
    %4 = vector.load %arg3[%c0_3, %c0_4, %c0_5] : memref<2x128x128xbf16, #tpu.memory_space<vmem>>, vector<2x128x128xbf16>
    "tpu.trace_start"() <{level = 10 : i32, message = "bqd,bkd->bqk"}> : () -> ()
    %cst = arith.constant dense<0.000000e+00> : vector<2x128x128xf32>
    %5 = tpu.matmul %3, %4, %cst {dimension_numbers = #tpu.dot_dimension_numbers<[2], [2], [1], [1], [0, 0, 0, 1, 1, 1], [0], [0]>} : vector<2x128x128xbf16>, vector<2x128x128xbf16>, vector<2x128x128xf32> -> vector<2x128x128xf32>
    "tpu.trace_stop"() : () -> ()
    %cst_6 = arith.constant 0.0883883461 : f32
    %6 = vector.broadcast %cst_6 : f32 to vector<2x128x128xf32>
    %7 = arith.mulf %5, %6 : vector<2x128x128xf32>
    %c0_7 = arith.constant 0 : index
    %c0_8 = arith.constant 0 : index
    %c0_9 = arith.constant 0 : index
    %8 = vector.load %arg6[%c0_7, %c0_8, %c0_9] : memref<2x128x1xf32, #tpu.memory_space<vmem>>, vector<2x128x1xf32>
    %cst_10 = arith.constant dense<0xFF800000> : vector<2x128xf32>
    %9 = vector.multi_reduction <maximumf>, %7, %cst_10 [2] : vector<2x128x128xf32> to vector<2x128xf32>
    %10 = vector.shape_cast %9 : vector<2x128xf32> to vector<2x128x1xf32>
    %11 = arith.maximumf %8, %10 : vector<2x128x1xf32>
    %c0_11 = arith.constant 0 : index
    %c0_12 = arith.constant 0 : index
    %c0_13 = arith.constant 0 : index
    %12 = vector.load %arg6[%c0_11, %c0_12, %c0_13] : memref<2x128x1xf32, #tpu.memory_space<vmem>>, vector<2x128x1xf32>
    %13 = arith.subf %12, %11 : vector<2x128x1xf32>
    %14 = math.exp %13 : vector<2x128x1xf32>
    %15 = vector.broadcast %11 : vector<2x128x1xf32> to vector<2x128x128xf32>
    %16 = arith.subf %7, %15 : vector<2x128x128xf32>
    %17 = math.exp %16 : vector<2x128x128xf32>
    %c0_14 = arith.constant 0 : index
    %c0_15 = arith.constant 0 : index
    %c0_16 = arith.constant 0 : index
    %18 = vector.load %arg7[%c0_14, %c0_15, %c0_16] : memref<2x128x1xf32, #tpu.memory_space<vmem>>, vector<2x128x1xf32>
    %19 = arith.mulf %14, %18 : vector<2x128x1xf32>
    %cst_17 = arith.constant dense<0.000000e+00> : vector<2x128xf32>
    %20 = vector.multi_reduction <add>, %17, %cst_17 [2] : vector<2x128x128xf32> to vector<2x128xf32>
    %21 = vector.shape_cast %20 : vector<2x128xf32> to vector<2x128x1xf32>
    %22 = arith.addf %19, %21 : vector<2x128x1xf32>
    %c0_18 = arith.constant 0 : index
    %c0_19 = arith.constant 0 : index
    %c0_20 = arith.constant 0 : index
    %23 = vector.load %arg7[%c0_18, %c0_19, %c0_20] : memref<2x128x1xf32, #tpu.memory_space<vmem>>, vector<2x128x1xf32>
    tpu.vector_store %arg7[%c0_18, %c0_19, %c0_20], %22 {strides = array<i32>} : memref<2x128x1xf32, #tpu.memory_space<vmem>>, vector<2x128x1xf32>,
    %c0_21 = arith.constant 0 : index
    %c0_22 = arith.constant 0 : index
    %c0_23 = arith.constant 0 : index
    %24 = vector.load %arg8[%c0_21, %c0_22, %c0_23] : memref<2x128x128xf32, #tpu.memory_space<vmem>>, vector<2x128x128xf32>
    %25 = vector.broadcast %14 : vector<2x128x1xf32> to vector<2x128x128xf32>
    %26 = arith.mulf %25, %24 : vector<2x128x128xf32>
    %27 = arith.truncf %17 : vector<2x128x128xf32> to vector<2x128x128xbf16>
    %c0_24 = arith.constant 0 : index
    %c0_25 = arith.constant 0 : index
    %c0_26 = arith.constant 0 : index
    %28 = vector.load %arg4[%c0_24, %c0_25, %c0_26] : memref<2x128x128xbf16, #tpu.memory_space<vmem>>, vector<2x128x128xbf16>
    "tpu.trace_start"() <{level = 10 : i32, message = "bqk,bkd->bqd"}> : () -> ()
    %cst_27 = arith.constant dense<0.000000e+00> : vector<2x128x128xf32>
    %29 = tpu.matmul %27, %28, %cst_27 {dimension_numbers = #tpu.dot_dimension_numbers<[2], [1], [1], [2], [0, 0, 0, 1, 1, 2], [0], [0]>} : vector<2x128x128xbf16>, vector<2x128x128xbf16>, vector<2x128x128xf32> -> vector<2x128x128xf32>
    "tpu.trace_stop"() : () -> ()
    %30 = arith.addf %26, %29 : vector<2x128x128xf32>
    %c0_28 = arith.constant 0 : index
    %c0_29 = arith.constant 0 : index
    %c0_30 = arith.constant 0 : index
    %31 = vector.load %arg8[%c0_28, %c0_29, %c0_30] : memref<2x128x128xf32, #tpu.memory_space<vmem>>, vector<2x128x128xf32>
    tpu.vector_store %arg8[%c0_28, %c0_29, %c0_30], %30 {strides = array<i32>} : memref<2x128x128xf32, #tpu.memory_space<vmem>>, vector<2x128x128xf32>,
    %c0_31 = arith.constant 0 : index
    %c0_32 = arith.constant 0 : index
    %c0_33 = arith.constant 0 : index
    %32 = vector.load %arg6[%c0_31, %c0_32, %c0_33] : memref<2x128x1xf32, #tpu.memory_space<vmem>>, vector<2x128x1xf32>
    tpu.vector_store %arg6[%c0_31, %c0_32, %c0_33], %11 {strides = array<i32>} : memref<2x128x1xf32, #tpu.memory_space<vmem>>, vector<2x128x1xf32>,
    %c1_i32 = arith.constant 1 : i32
    %33 = arith.cmpi eq, %arg1, %c1_i32 : i32
    %34 = arith.extui %33 : i1 to i32
    %c0_i32_34 = arith.constant 0 : i32
    %35 = arith.cmpi ne, %34, %c0_i32_34 : i32
    scf.if %35 {
      %c0_35 = arith.constant 0 : index
      %c0_36 = arith.constant 0 : index
      %c0_37 = arith.constant 0 : index
      %36 = vector.load %arg7[%c0_35, %c0_36, %c0_37] : memref<2x128x1xf32, #tpu.memory_space<vmem>>, vector<2x128x1xf32>
      %37 = tpu.reciprocal %36 {approx = true} : vector<2x128x1xf32> -> vector<2x128x1xf32>
      %c0_38 = arith.constant 0 : index
      %c0_39 = arith.constant 0 : index
      %c0_40 = arith.constant 0 : index
      %38 = vector.load %arg8[%c0_38, %c0_39, %c0_40] : memref<2x128x128xf32, #tpu.memory_space<vmem>>, vector<2x128x128xf32>
      %39 = vector.broadcast %37 : vector<2x128x1xf32> to vector<2x128x128xf32>
      %40 = arith.mulf %38, %39 : vector<2x128x128xf32>
      %41 = arith.truncf %40 : vector<2x128x128xf32> to vector<2x128x128xbf16>
      %c0_41 = arith.constant 0 : index
      %c0_42 = arith.constant 0 : index
      %c0_43 = arith.constant 0 : index
      %42 = vector.load %arg5[%c0_41, %c0_42, %c0_43] : memref<2x128x128xbf16, #tpu.memory_space<vmem>>, vector<2x128x128xbf16>
      tpu.vector_store %arg5[%c0_41, %c0_42, %c0_43], %41 {strides = array<i32>} : memref<2x128x128xbf16, #tpu.memory_space<vmem>>, vector<2x128x128xbf16>,
    } else {
    }
    return
  }
  func.func @transform_0(%arg0: i32, %arg1: i32) -> (i32, i32, i32) {
    %c0_i32 = arith.constant 0 : i32
    %c0_i32_0 = arith.constant 0 : i32
    %c0_i32_1 = arith.constant 0 : i32
    return %c0_i32, %arg0, %c0_i32_0 : i32, i32, i32
  }
  func.func @transform_1(%arg0: i32, %arg1: i32) -> (i32, i32, i32) {
    %c0_i32 = arith.constant 0 : i32
    %c0_i32_0 = arith.constant 0 : i32
    %c0_i32_1 = arith.constant 0 : i32
    return %c0_i32, %arg1, %c0_i32_0 : i32, i32, i32
  }
  func.func @transform_2(%arg0: i32, %arg1: i32) -> (i32, i32, i32) {
    %c0_i32 = arith.constant 0 : i32
    %c0_i32_0 = arith.constant 0 : i32
    %c0_i32_1 = arith.constant 0 : i32
    return %c0_i32, %arg1, %c0_i32_0 : i32, i32, i32
  }
  func.func @transform_3(%arg0: i32, %arg1: i32) -> (i32, i32, i32) {
    %c0_i32 = arith.constant 0 : i32
    %c0_i32_0 = arith.constant 0 : i32
    %c0_i32_1 = arith.constant 0 : i32
    return %c0_i32, %arg0, %c0_i32_0 : i32, i32, i32
  }
}

</mosaic_0001>

<bundles_post_ra>
// kernel: tpu_custom_call.1
= control target key start
LH: loop header
LB: loop body
LE: loop exit
PB: predicated region body
PF: predicated region fallthrough
CT: control target
= control target key end

     0   :  { %8 = vsyncpa [#allocation6], 0  ;;  %s5087_s0 = inlined_call_operand.hbm [shape: bf16[2,256,128], index: 0, kind: input, shape index: {}]   ;;  %s5088_s1 = inlined_call_operand.hbm [shape: bf16[2,256,128], index: 1, kind: input, shape index: {}]   ;;  %s5089_s2 = inlined_call_operand.hbm [shape: bf16[2,256,128], index: 2, kind: input, shape index: {}]   ;;  %s5090_s3 = inlined_call_operand.hbm [shape: bf16[2,256,128], index: 3, kind: output, shape index: {}]  }
   0x1   :  { %10 = vsyncpa [#allocation6 + $0x1], 0 }
   0x2   :  { %11 = vsyncpa [#allocation9], 0 }
   0x3   :  { %13 = vsyncpa [#allocation9 + $0x1], 0 }
   0x4   :  { %14 = vsyncpa [#allocation7], 0 }
   0x5   :  { %16 = vsyncpa [#allocation7 + $0x1], 0  ;;  %s3878_s12 = smov 0   ;;  %s3880_s13 = smov 0  }
   0x6   :  { %s3882_s14 = smov 0   ;;  %s3884_s15 = smov 0  }
   0x7   :  { %s3886_s16 = smov 0   ;;  %s3888_s17 = smov 0  }
   0x8   :  { %s3890_s18 = smov 0   ;;  %s3892_s19 = smov 0  }
   0x9   :  { %s3894_s20 = smov 0   ;;  %s3896_s21 = smov 0  }
   0xa   :  { %s3898_s22 = smov 0  }
   0xb LB: > { %5134 = sst [smem:[#allocation26_spill]] %s3799_s15  ;;  %s3934_s23 = sadd.s32 4294967295, %s3827_s22   ;;  %s3827_s22 = sphi %s3898_s22, %s22_s22   ;;  %s3823_s21 = sphi %s3896_s21, %s5263_s21   ;;  %s3819_s20 = sphi %s3894_s20, %s5270_s20   ;;  %s3815_s19 = sphi %s3892_s19, %s5261_s19   ;;  %s3811_s18 = sphi %s3890_s18, %s5269_s18   ;;  %s3807_s17 = sphi %s3888_s17, %s5260_s17   ;;  %s3803_s16 = sphi %s3886_s16, %s5268_s16   ;;  %s3799_s15 = sphi %s3884_s15, %s5267_s15   ;;  %s3795_s14 = sphi %s3882_s14, %s5266_s14   ;;  %s3791_s13 = sphi %s3880_s13, %s5265_s13   ;;  %s3787_s12 = sphi %s3878_s12, %s5264_s12  }
   0xc   : > { %5135 = sst [smem:[#allocation27_spill]] %s3807_s17  ;;  %s2895_s24 = sadd.s32 4294967294, %s3827_s22  }
   0xd   : > { %5136 = sst [smem:[#allocation28_spill]] %s3823_s21  ;;  %s31_s25 = sadd.s32 1, %s3819_s20 }
   0xe   : > { %s34_s26 = sadd.s32 1, %s3823_s21  ;;  %p32_p0 = scmp.ge.s32.totalorder %s31_s25, 2 }
   0xf   : > { %s41_s27 = sadd.s32 1, %s3807_s17  ;;  %p48_p1 = scmp.ne.s32.totalorder %s3807_s17, %s3803_s16 }
  0x10   : > { %p49_p2 = scmp.eq.s32.totalorder %s3827_s22, 0  ;;  %s5272_s25 = smov (%p32_p0, %s31_s25), 0 }
  0x11   : > { %5137 = sst [smem:[#allocation29_spill]] %s5272_s25  ;;  %s5274_s26 = smov (!%p32_p0, %s34_s26), %s3823_s21 }
  0x12   : > { %p3951_p3 = por %p49_p2, %p48_p1  ;;  %p5091_p4 = scmp.ne.s32.totalorder %s3803_s16, %s3799_s15 }
  0x13   : > { %p36_p5 = scmp.ge.s32.totalorder %s5274_s26, 2  ;;  %p55_p6 = scmp.eq.s32.totalorder %s3934_s23, 0 }
  0x14   : > { %s64_s29 = ssub.s32 %s3819_s20, %s5272_s25  ;;  %s67_s30 = sadd.s32 1, %s3795_s14 }
  0x15   : > { %s5276_s26 = smov (%p36_p5, %s5274_s26), 0  ;;  %p3968_p7 = por %p55_p6, %p5091_p4 }
  0x16   : > { %5139 = sst [smem:[#allocation30_spill]] %s5276_s26  ;;  %p65_p8 = scmp.eq.s32.totalorder %s64_s29, 0 }
  0x17   : > { %s38_s5 = ssub.s32 %s3823_s21, %s5276_s26  ;;  %p74_p9 = scmp.ne.s32.totalorder %s3795_s14, %s3791_s13 }
  0x18   : > { %p39_p10 = scmp.eq.s32.totalorder %s38_s5, 0  ;;  %p80_p11 = scmp.ne.s32.totalorder %s3791_s13, %s3787_s12 }
  0x19   : > { %s3979_s6 = scalar_select %p65_p8, %s3795_s14, %s67_s30  }
  0x1a   : > { %s3982_s7 = scalar_select %p39_p10, %s3807_s17, %s41_s27  }
  0x1b   : > { %5141 = sst [smem:[#allocation31_spill]] %s3979_s6  ;;  %p3986_p12 = por %p74_p9, %p49_p2 }
  0x1c   : > { %5142 = sst [smem:[#allocation32_spill]] %s3982_s7  ;;  %p3992_p13 = por %p80_p11, %p55_p6 }
  0x1d   : > { %p130_p0 = scmp.eq.s32.totalorder %s3934_s23, 3  ;;  %p136_p5 = scmp.eq.s32.totalorder %s2895_s24, 3 }
  0x1e   : > { %p5146_p8 = scmp.ne.s32.totalorder %s3803_s16, %s3799_s15  ;;  %p2897_p2 = scmp.ge.s32.totalorder %s3827_s22, 4 }
  0x1f   : > { %p4000_p4 = por %p130_p0, %p48_p1 }
  0x20   : > { %p4007_p10 = por %p136_p5, %p5146_p8  ;;  %152 = sbr.rel (%p2897_p2) target bundleno = 78 (0x4e), region = 16 }
  0x22   : > { %s5147_s11 = scalar_select %p4007_p10, 1, 0 }
  0x24   : > { %5148 = sst [smem:[#allocation33_spill]] %s5147_s11 }
  0x27   : > { %s156_s12 = sand.u32 1, %s3807_s17   ;;  %s3005_s24 = sshll.u32 %s3823_s21, 10 }
  0x28   : > { %s2898_s27 = sshll.u32 %s156_s12, 7  ;;  %s166_s5 = scalar_lea.hbm %s5087_s0, %s3005_s24 }
  0x29   : > { %s3328_s26 = scalar_select %p3951_p3, [#allocation0], [#allocation20] }
  0x2a   : > { %s160_s25 = scalar_lea.vmem [#allocation5], %s2898_s27  ;;  %s3829_s11 = smov 2048  }
  0x2b   : > { %s179_s7 = sshll.u32 %s160_s25, 4  ;;  %s171_s6 = sld [smem:[%s3328_s26]]   ;;  %s180_s7 = int_to_ptr.vmem [resolvable:$true] %s179_s7 }
  0x2c   : > { %3329 = sst [smem:[#allocation13]] (%p3951_p3), %s3829_s11  ;;  %s3830_s17 = smov 1024  }
  0x2d   : > { %3330 = sst [smem:[#allocation13 + $0x1]] (%p3951_p3), %s3830_s17  ;;  %s3831_s21 = smov 16  }
  0x2e   : > { %3331 = sst [smem:[#allocation13 + $0x2]] (%p3951_p3), %s3831_s21  ;;  %s3832_s15 = smov 64  }
  0x2f   : > { %3332 = sst [smem:[#allocation13 + $0x3]] (%p3951_p3), %s3832_s15  ;;  %s3833_s27 = smov 4  }
  0x30   : > { %3333 = sst [smem:[#allocation13 + $0x4]] (%p3951_p3), %s3832_s15  ;;  %s157_s26 = scalar_lea.sflag [#allocation6], %s156_s12 }
  0x31   : > { %s2901_s24 = sshll.u32 %s171_s6, 26  ;;  %3334 = sst [smem:[#allocation13 + $0x5]] (%p3951_p3), %s3833_s27 }
  0x32   : > { %s2902_s25 = sadd.s32 134217728, %s2901_s24  ;;  %s3834_s29 = smov [#allocation12]  }
  0x33   : > { %3335 = dma.general (%p3951_p3), %s166_s5, 2048, %s180_s7, %s157_s26, %s3834_s29, [#allocation13], %s2902_s25, 0  }
  0x34   : > { %s202_s17 = sand.u32 1, %s3827_s22   ;;  %s204_s21 = sand.u32 1, %s3795_s14  }
  0x35   : > { %s2903_s15 = sshll.u32 %s204_s21, 7  ;;  %s3006_s6 = sshll.u32 %s3819_s20, 10 }
  0x36   : > { %s212_s12 = scalar_lea.hbm %s5088_s1, %s3006_s6  ;;  %s206_s7 = scalar_lea.vmem [#allocation8], %s2903_s15 }
  0x37   : > { %s3336_s28 = scalar_select %p3986_p12, [#allocation0], [#allocation21] }
  0x38   : > { %s225_s5 = sshll.u32 %s206_s7, 4  ;;  %s3835_s27 = smov 2048   ;;  %s226_s5 = int_to_ptr.vmem [resolvable:$true] %s225_s5 }
  0x39   : > { %s217_s24 = sld [smem:[%s3336_s28]]   ;;  %s3836_s25 = smov 1024  }
  0x3a   : > { %3337 = sst [smem:[#allocation15]] (%p3986_p12), %s3835_s27  ;;  %s3837_s26 = smov 16  }
  0x3b   : > { %3338 = sst [smem:[#allocation15 + $0x1]] (%p3986_p12), %s3836_s25  ;;  %s3838_s29 = smov 64  }
  0x3c   : > { %3339 = sst [smem:[#allocation15 + $0x2]] (%p3986_p12), %s3837_s26  ;;  %s3839_s11 = smov 4  }
  0x3d   : > { %3340 = sst [smem:[#allocation15 + $0x3]] (%p3986_p12), %s3838_s29  ;;  %s203_s28 = scalar_lea.sflag [#allocation9], %s202_s17 }
  0x3e   : > { %3341 = sst [smem:[#allocation15 + $0x4]] (%p3986_p12), %s3838_s29  ;;  %s3840_s7 = smov [#allocation14]  }
  0x3f   : > { %s2906_s21 = sshll.u32 %s217_s24, 26  ;;  %3342 = sst [smem:[#allocation15 + $0x5]] (%p3986_p12), %s3839_s11 }
  0x40   : > { %s2907_s30 = sadd.s32 134217728, %s2906_s21 }
  0x41   : > { %3343 = dma.general (%p3986_p12), %s212_s12, 2048, %s226_s5, %s203_s28, %s3840_s7, [#allocation15], %s2907_s30, 0  }
  0x42   : > { %s258_s26 = scalar_lea.hbm %s5089_s2, %s3006_s6  ;;  %s252_s29 = scalar_lea.vmem [#allocation10], %s2903_s15 }
  0x43   : > { %s3344_s24 = scalar_select %p3986_p12, [#allocation0], [#allocation22] }
  0x44   : > { %s271_s11 = sshll.u32 %s252_s29, 4  ;;  %s3841_s17 = smov 2048   ;;  %s272_s11 = int_to_ptr.vmem [resolvable:$true] %s271_s11 }
  0x45   : > { %s263_s21 = sld [smem:[%s3344_s24]]   ;;  %s3842_s12 = smov 1024  }
  0x46   : > { %3345 = sst [smem:[#allocation17]] (%p3986_p12), %s3841_s17  ;;  %s3843_s5 = smov 16  }
  0x47   : > { %3346 = sst [smem:[#allocation17 + $0x1]] (%p3986_p12), %s3842_s12  ;;  %s3844_s30 = smov 64  }
  0x48   : > { %3347 = sst [smem:[#allocation17 + $0x2]] (%p3986_p12), %s3843_s5  ;;  %s3845_s15 = smov 4  }
  0x49   : > { %3348 = sst [smem:[#allocation17 + $0x3]] (%p3986_p12), %s3844_s30  ;;  %s3846_s27 = smov [#allocation16]  }
  0x4a   : > { %3349 = sst [smem:[#allocation17 + $0x4]] (%p3986_p12), %s3844_s30 }
  0x4b   : > { %s2911_s6 = sshll.u32 %s263_s21, 26  ;;  %3350 = sst [smem:[#allocation17 + $0x5]] (%p3986_p12), %s3845_s15 }
  0x4c   : > { %s2912_s7 = sadd.s32 134217728, %s2911_s6 }
  0x4d   : > { %3351 = dma.general (%p3986_p12), %s258_s26, 2048, %s272_s11, %s203_s28, %s3846_s27, [#allocation17], %s2912_s7, 0  }
  0x4e PF: > { %p2913_p1 = scmp.ge.s32.totalorder %s3827_s22, 1  ;;  %p292_p3 = scmp.lt.s32.totalorder %s3827_s22, 5 }
  0x50   : > { %p293_p6 = pnand %p2913_p1, %p292_p3 }
  0x52   : > { %296 = sbr.rel (%p293_p6) target bundleno = 1201 (0x4b1), region = 32 }
  0x59   : > { %s4077_s25 = sand.u32 1, %s3803_s16  }
  0x5a   : > { %s2914_s24 = sshll.u32 %s4077_s25, 7  ;;  %s299_s29 = scalar_lea.sflag [#allocation6], %s4077_s25 }
  0x5b   : > { %s4081_s21 = scalar_lea.vmem [#allocation5], %s2914_s24 }
  0x5c   : > { %3774 = dma.done.wait (%p3968_p7), %s299_s29, 2048  }
  0x5d   : > { %3776 = vsyncadd (%p3968_p7), %s299_s29, 4294965248  ;;  %s307_s8 = sand.u32 1, %s3934_s23   ;;  %s309_s28 = sand.u32 1, %s3791_s13  }
  0x5e   : > { %s2915_s26 = sshll.u32 %s309_s28, 7  ;;  %s308_s11 = scalar_lea.sflag [#allocation9], %s307_s8 }
  0x5f   : > { %s4089_s17 = scalar_lea.vmem [#allocation8], %s2915_s26 }
  0x60   : > { %3778 = dma.done.wait (%p3992_p13), %s308_s11, 4096  }
  0x61   : > { %3780 = vsyncadd (%p3992_p13), %s308_s11, 4294963200  ;;  %s4095_s12 = scalar_lea.vmem [#allocation10], %s2915_s26  ;;  %s4097_s5 = scalar_lea.vmem [#allocation11], %s2914_s24 }
  0x62   : > { %p2918_p7 = scmp.ne.s32.totalorder %s3811_s18, 0 }
  0x63   : > { %vm362_vm0 = vcmask (!%p2918_p7), 7168   ;;  %v3847_v0 = vmov (!%p2918_p7), -inf   ;;  %v3848_v1 = vmov (!%p2918_p7), 0.0  }
  0x64   : > { %361 = sbr.rel (%p2918_p7) target bundleno = 148 (0x94), region = 48  ;;  %363 = vst.msk [vmem:[#allocation2] sm:$0xff] (!%p2918_p7), %vm362_vm0, %v3847_v0  ;;  %364 = vst.msk [vmem:[#allocation2 + $0x8] sm:$0xff] (!%p2918_p7), %vm362_vm0, %v3847_v0 }
  0x65   : > { %365 = vst.msk [vmem:[#allocation2 + $0x10] sm:$0xff] (!%p2918_p7), %vm362_vm0, %v3847_v0  ;;  %366 = vst.msk [vmem:[#allocation2 + $0x18] sm:$0xff] (!%p2918_p7), %vm362_vm0, %v3847_v0 }
  0x66   : > { %367 = vst.msk [vmem:[#allocation2 + $0x20] sm:$0xff] (!%p2918_p7), %vm362_vm0, %v3847_v0  ;;  %368 = vst.msk [vmem:[#allocation2 + $0x28] sm:$0xff] (!%p2918_p7), %vm362_vm0, %v3847_v0 }
  0x67   : > { %369 = vst.msk [vmem:[#allocation2 + $0x30] sm:$0xff] (!%p2918_p7), %vm362_vm0, %v3847_v0  ;;  %370 = vst.msk [vmem:[#allocation2 + $0x38] sm:$0xff] (!%p2918_p7), %vm362_vm0, %v3847_v0 }
  0x68   : > { %371 = vst.msk [vmem:[#allocation2 + $0x40] sm:$0xff] (!%p2918_p7), %vm362_vm0, %v3847_v0  ;;  %372 = vst.msk [vmem:[#allocation2 + $0x48] sm:$0xff] (!%p2918_p7), %vm362_vm0, %v3847_v0 }
  0x69   : > { %373 = vst.msk [vmem:[#allocation2 + $0x50] sm:$0xff] (!%p2918_p7), %vm362_vm0, %v3847_v0  ;;  %374 = vst.msk [vmem:[#allocation2 + $0x58] sm:$0xff] (!%p2918_p7), %vm362_vm0, %v3847_v0 }
  0x6a   : > { %375 = vst.msk [vmem:[#allocation2 + $0x60] sm:$0xff] (!%p2918_p7), %vm362_vm0, %v3847_v0  ;;  %376 = vst.msk [vmem:[#allocation2 + $0x68] sm:$0xff] (!%p2918_p7), %vm362_vm0, %v3847_v0 }
  0x6b   : > { %377 = vst.msk [vmem:[#allocation2 + $0x70] sm:$0xff] %vm362_vm0, %v3847_v0  ;;  %378 = vst.msk [vmem:[#allocation2 + $0x78] sm:$0xff] %vm362_vm0, %v3847_v0 }
  0x6c   : > { %379 = vst.msk [vmem:[#allocation2 + $0x80] sm:$0xff] %vm362_vm0, %v3847_v0  ;;  %380 = vst.msk [vmem:[#allocation2 + $0x88] sm:$0xff] %vm362_vm0, %v3847_v0 }
  0x6d   : > { %381 = vst.msk [vmem:[#allocation2 + $0x90] sm:$0xff] %vm362_vm0, %v3847_v0  ;;  %382 = vst.msk [vmem:[#allocation2 + $0x98] sm:$0xff] %vm362_vm0, %v3847_v0 }
  0x6e   : > { %383 = vst.msk [vmem:[#allocation2 + $0xa0] sm:$0xff] %vm362_vm0, %v3847_v0  ;;  %384 = vst.msk [vmem:[#allocation2 + $0xa8] sm:$0xff] %vm362_vm0, %v3847_v0 }
  0x6f   : > { %385 = vst.msk [vmem:[#allocation2 + $0xb0] sm:$0xff] %vm362_vm0, %v3847_v0  ;;  %386 = vst.msk [vmem:[#allocation2 + $0xb8] sm:$0xff] %vm362_vm0, %v3847_v0 }
  0x70   : > { %387 = vst.msk [vmem:[#allocation2 + $0xc0] sm:$0xff] %vm362_vm0, %v3847_v0  ;;  %388 = vst.msk [vmem:[#allocation2 + $0xc8] sm:$0xff] %vm362_vm0, %v3847_v0 }
  0x71   : > { %389 = vst.msk [vmem:[#allocation2 + $0xd0] sm:$0xff] %vm362_vm0, %v3847_v0  ;;  %390 = vst.msk [vmem:[#allocation2 + $0xd8] sm:$0xff] %vm362_vm0, %v3847_v0 }
  0x72   : > { %391 = vst.msk [vmem:[#allocation2 + $0xe0] sm:$0xff] %vm362_vm0, %v3847_v0  ;;  %392 = vst.msk [vmem:[#allocation2 + $0xe8] sm:$0xff] %vm362_vm0, %v3847_v0 }
  0x73   : > { %393 = vst.msk [vmem:[#allocation2 + $0xf0] sm:$0xff] %vm362_vm0, %v3847_v0  ;;  %394 = vst.msk [vmem:[#allocation2 + $0xf8] sm:$0xff] %vm362_vm0, %v3847_v0 }
  0x74   : > { %395 = vst.msk [vmem:[#allocation3] sm:$0xff] %vm362_vm0, %v3848_v1  ;;  %396 = vst.msk [vmem:[#allocation3 + $0x8] sm:$0xff] %vm362_vm0, %v3848_v1 }
  0x75   : > { %397 = vst.msk [vmem:[#allocation3 + $0x10] sm:$0xff] %vm362_vm0, %v3848_v1  ;;  %398 = vst.msk [vmem:[#allocation3 + $0x18] sm:$0xff] %vm362_vm0, %v3848_v1 }
  0x76   : > { %399 = vst.msk [vmem:[#allocation3 + $0x20] sm:$0xff] %vm362_vm0, %v3848_v1  ;;  %400 = vst.msk [vmem:[#allocation3 + $0x28] sm:$0xff] %vm362_vm0, %v3848_v1 }
  0x77   : > { %401 = vst.msk [vmem:[#allocation3 + $0x30] sm:$0xff] %vm362_vm0, %v3848_v1  ;;  %402 = vst.msk [vmem:[#allocation3 + $0x38] sm:$0xff] %vm362_vm0, %v3848_v1 }
  0x78   : > { %403 = vst.msk [vmem:[#allocation3 + $0x40] sm:$0xff] %vm362_vm0, %v3848_v1  ;;  %404 = vst.msk [vmem:[#allocation3 + $0x48] sm:$0xff] %vm362_vm0, %v3848_v1 }
  0x79   : > { %405 = vst.msk [vmem:[#allocation3 + $0x50] sm:$0xff] %vm362_vm0, %v3848_v1  ;;  %406 = vst.msk [vmem:[#allocation3 + $0x58] sm:$0xff] %vm362_vm0, %v3848_v1 }
  0x7a   : > { %407 = vst.msk [vmem:[#allocation3 + $0x60] sm:$0xff] %vm362_vm0, %v3848_v1  ;;  %408 = vst.msk [vmem:[#allocation3 + $0x68] sm:$0xff] %vm362_vm0, %v3848_v1 }
  0x7b   : > { %409 = vst.msk [vmem:[#allocation3 + $0x70] sm:$0xff] %vm362_vm0, %v3848_v1  ;;  %410 = vst.msk [vmem:[#allocation3 + $0x78] sm:$0xff] %vm362_vm0, %v3848_v1 }
  0x7c   : > { %411 = vst.msk [vmem:[#allocation3 + $0x80] sm:$0xff] %vm362_vm0, %v3848_v1  ;;  %412 = vst.msk [vmem:[#allocation3 + $0x88] sm:$0xff] %vm362_vm0, %v3848_v1 }
  0x7d   : > { %413 = vst.msk [vmem:[#allocation3 + $0x90] sm:$0xff] %vm362_vm0, %v3848_v1  ;;  %414 = vst.msk [vmem:[#allocation3 + $0x98] sm:$0xff] %vm362_vm0, %v3848_v1 }
  0x7e   : > { %415 = vst.msk [vmem:[#allocation3 + $0xa0] sm:$0xff] %vm362_vm0, %v3848_v1  ;;  %416 = vst.msk [vmem:[#allocation3 + $0xa8] sm:$0xff] %vm362_vm0, %v3848_v1 }
  0x7f   : > { %417 = vst.msk [vmem:[#allocation3 + $0xb0] sm:$0xff] %vm362_vm0, %v3848_v1  ;;  %418 = vst.msk [vmem:[#allocation3 + $0xb8] sm:$0xff] %vm362_vm0, %v3848_v1 }
  0x80   : > { %419 = vst.msk [vmem:[#allocation3 + $0xc0] sm:$0xff] %vm362_vm0, %v3848_v1  ;;  %420 = vst.msk [vmem:[#allocation3 + $0xc8] sm:$0xff] %vm362_vm0, %v3848_v1 }
  0x81   : > { %421 = vst.msk [vmem:[#allocation3 + $0xd0] sm:$0xff] %vm362_vm0, %v3848_v1  ;;  %422 = vst.msk [vmem:[#allocation3 + $0xd8] sm:$0xff] %vm362_vm0, %v3848_v1 }
  0x82   : > { %423 = vst.msk [vmem:[#allocation3 + $0xe0] sm:$0xff] %vm362_vm0, %v3848_v1  ;;  %424 = vst.msk [vmem:[#allocation3 + $0xe8] sm:$0xff] %vm362_vm0, %v3848_v1 }
  0x83   : > { %425 = vst.msk [vmem:[#allocation3 + $0xf0] sm:$0xff] %vm362_vm0, %v3848_v1  ;;  %426 = vst.msk [vmem:[#allocation3 + $0xf8] sm:$0xff] %vm362_vm0, %v3848_v1 }
  0x84   : > { %427 = vst [vmem:[#allocation4] sm:$0xff] %v3848_v1  ;;  %428 = vst [vmem:[#allocation4 + $0x8] sm:$0xff] %v3848_v1 }
  0x85   : > { %429 = vst [vmem:[#allocation4 + $0x10] sm:$0xff] %v3848_v1  ;;  %430 = vst [vmem:[#allocation4 + $0x18] sm:$0xff] %v3848_v1 }
  0x86   : > { %431 = vst [vmem:[#allocation4 + $0x20] sm:$0xff] %v3848_v1  ;;  %432 = vst [vmem:[#allocation4 + $0x28] sm:$0xff] %v3848_v1 }
  0x87   : > { %433 = vst [vmem:[#allocation4 + $0x30] sm:$0xff] %v3848_v1  ;;  %434 = vst [vmem:[#allocation4 + $0x38] sm:$0xff] %v3848_v1 }
  0x88   : > { %435 = vst [vmem:[#allocation4 + $0x40] sm:$0xff] %v3848_v1  ;;  %436 = vst [vmem:[#allocation4 + $0x48] sm:$0xff] %v3848_v1 }
  0x89   : > { %437 = vst [vmem:[#allocation4 + $0x50] sm:$0xff] %v3848_v1  ;;  %438 = vst [vmem:[#allocation4 + $0x58] sm:$0xff] %v3848_v1 }
  0x8a   : > { %439 = vst [vmem:[#allocation4 + $0x60] sm:$0xff] %v3848_v1  ;;  %440 = vst [vmem:[#allocation4 + $0x68] sm:$0xff] %v3848_v1 }
  0x8b   : > { %441 = vst [vmem:[#allocation4 + $0x70] sm:$0xff] %v3848_v1  ;;  %442 = vst [vmem:[#allocation4 + $0x78] sm:$0xff] %v3848_v1 }
  0x8c   : > { %443 = vst [vmem:[#allocation4 + $0x80] sm:$0xff] %v3848_v1  ;;  %444 = vst [vmem:[#allocation4 + $0x88] sm:$0xff] %v3848_v1 }
  0x8d   : > { %445 = vst [vmem:[#allocation4 + $0x90] sm:$0xff] %v3848_v1  ;;  %446 = vst [vmem:[#allocation4 + $0x98] sm:$0xff] %v3848_v1 }
  0x8e   : > { %447 = vst [vmem:[#allocation4 + $0xa0] sm:$0xff] %v3848_v1  ;;  %448 = vst [vmem:[#allocation4 + $0xa8] sm:$0xff] %v3848_v1 }
  0x8f   : > { %449 = vst [vmem:[#allocation4 + $0xb0] sm:$0xff] %v3848_v1  ;;  %450 = vst [vmem:[#allocation4 + $0xb8] sm:$0xff] %v3848_v1 }
  0x90   : > { %451 = vst [vmem:[#allocation4 + $0xc0] sm:$0xff] %v3848_v1  ;;  %452 = vst [vmem:[#allocation4 + $0xc8] sm:$0xff] %v3848_v1 }
  0x91   : > { %453 = vst [vmem:[#allocation4 + $0xd0] sm:$0xff] %v3848_v1  ;;  %454 = vst [vmem:[#allocation4 + $0xd8] sm:$0xff] %v3848_v1 }
  0x92   : > { %455 = vst [vmem:[#allocation4 + $0xe0] sm:$0xff] %v3848_v1  ;;  %456 = vst [vmem:[#allocation4 + $0xe8] sm:$0xff] %v3848_v1 }
  0x93   : > { %457 = vst [vmem:[#allocation4 + $0xf0] sm:$0xff] %v3848_v1  ;;  %458 = vst [vmem:[#allocation4 + $0xf8] sm:$0xff] %v3848_v1 }
  0x94 PF: > { %v3487_v2 = vld [vmem:[%s4089_s17] sm:$0xff]   ;;  %v3489_v4 = vld [vmem:[%s4089_s17 + $0x8] sm:$0xff]   ;;  %v3491_v6 = vld [vmem:[%s4089_s17 + $0x10] sm:$0xff]   ;;  %vm1581_vm1 = vcmask 7168   ;;  %p2967_p9 = scmp.ne.s32.totalorder %s3811_s18, 1 }
  0x95   : > { %v3488_v3 = vld [vmem:[%s4089_s17 + $0x40] sm:$0xff]   ;;  %3200 = vmatprep.subr.bf16.mxu0 %v3487_v2  ;;  %v3490_v5 = vld [vmem:[%s4089_s17 + $0x48] sm:$0xff]   ;;  %v3492_v7 = vld [vmem:[%s4089_s17 + $0x50] sm:$0xff]  }
  0x96   : > { %3232 = vmatprep.subr.bf16.mxu1 %v3488_v3  ;;  %3201 = vmatpush3.bf16.xpose.msra.mxu0 %v3487_v2  ;;  %v3493_v8 = vld [vmem:[%s4089_s17 + $0x18] sm:$0xff]   ;;  %v3503_v10 = vld [vmem:[%s4081_s21] sm:$0xff]   ;;  %v3497_v14 = vld [vmem:[%s4089_s17 + $0x28] sm:$0xff]  }
  0x97   : > { %3233 = vmatpush3.bf16.xpose.msra.mxu1 %v3488_v3  ;;  %3202 = vmatprep.subr.bf16.mxu0 %v3489_v4  ;;  %v3494_v9 = vld [vmem:[%s4089_s17 + $0x58] sm:$0xff]   ;;  %v3504_v11 = vld [vmem:[%s4081_s21 + $0x40] sm:$0xff]   ;;  %v3498_v15 = vld [vmem:[%s4089_s17 + $0x68] sm:$0xff]  }
  0x98   : > { %3234 = vmatprep.subr.bf16.mxu1 %v3490_v5  ;;  %3216 = vmatprep.mubr.bf16.mxu0 %v3503_v10  ;;  %v3495_v12 = vld [vmem:[%s4089_s17 + $0x20] sm:$0xff]   ;;  %v3499_v16 = vld [vmem:[%s4089_s17 + $0x30] sm:$0xff]   ;;  %v3501_v18 = vld [vmem:[%s4089_s17 + $0x38] sm:$0xff]  }
  0x99   : > { %3248 = vmatprep.mubr.bf16.mxu1 %v3504_v11  ;;  %v3496_v13 = vld [vmem:[%s4089_s17 + $0x60] sm:$0xff]   ;;  %v3500_v17 = vld [vmem:[%s4089_s17 + $0x70] sm:$0xff]   ;;  %v3502_v19 = vld [vmem:[%s4089_s17 + $0x78] sm:$0xff]  }
  0x9a   : > { %v3505_v20 = vld [vmem:[%s4081_s21 + $0x8] sm:$0xff]   ;;  %v3507_v22 = vld [vmem:[%s4081_s21 + $0x10] sm:$0xff]   ;;  %v3508_v24 = vld [vmem:[%s4081_s21 + $0x18] sm:$0xff]  }
  0x9b   : > { %v3506_v21 = vld [vmem:[%s4081_s21 + $0x48] sm:$0xff]   ;;  %v3509_v23 = vld [vmem:[%s4081_s21 + $0x50] sm:$0xff]   ;;  %v3510_v25 = vld [vmem:[%s4081_s21 + $0x58] sm:$0xff]  }
  0x9c   : > { %v3511_v26 = vld [vmem:[%s4081_s21 + $0x20] sm:$0xff]   ;;  %v3512_v28 = vld [vmem:[%s4081_s21 + $0x28] sm:$0xff]   ;;  %v3515_v30 = vld [vmem:[%s4081_s21 + $0x30] sm:$0xff]  }
  0x9d   : > { %v3513_v27 = vld [vmem:[%s4081_s21 + $0x60] sm:$0xff]   ;;  %v3514_v29 = vld [vmem:[%s4081_s21 + $0x68] sm:$0xff]   ;;  %v3517_v31 = vld [vmem:[%s4081_s21 + $0x70] sm:$0xff]  }
  0x9e   : > { %3203 = vmatpush3.bf16.xpose.msra.mxu0 %v3489_v4  ;;  %v3516_v32 = vld [vmem:[%s4081_s21 + $0x38] sm:$0xff]  }
  0x9f   : > { %3235 = vmatpush3.bf16.xpose.msra.mxu1 %v3490_v5  ;;  %3204 = vmatprep.subr.bf16.mxu0 %v3491_v6  ;;  %v3518_v33 = vld [vmem:[%s4081_s21 + $0x78] sm:$0xff]  }
  0xa0   : > { %3236 = vmatprep.subr.bf16.mxu1 %v3492_v7 }
  0xa6   : > { %3205 = vmatpush3.bf16.xpose.msra.mxu0 %v3491_v6  ;;  %v3849_v6 = vmov 0  }
  0xa7   : > { %3237 = vmatpush3.bf16.xpose.msra.mxu1 %v3492_v7  ;;  %3206 = vmatprep.subr.bf16.mxu0 %v3493_v8 }
  0xa8   : > { %3238 = vmatprep.subr.bf16.mxu1 %v3494_v9  ;;  %3486 = vset.pattern.permute.xlu0 %v3849_v6 }
  0xa9   : > { %3485 = vset.pattern.permute.xlu1 %v3849_v6  ;;  %v4408_v6 = vld [vmem:[#allocation2 + $0x8] sm:$0xff] }
  0xae   : > { %3207 = vmatpush3.bf16.xpose.msra.mxu0 %v3493_v8 }
  0xaf   : > { %3239 = vmatpush3.bf16.xpose.msra.mxu1 %v3494_v9  ;;  %3208 = vmatprep.subr.bf16.mxu0 %v3495_v12 }
  0xb0   : > { %3240 = vmatprep.subr.bf16.mxu1 %v3496_v13 }
  0xb6   : > { %3209 = vmatpush3.bf16.xpose.msra.mxu0 %v3495_v12 }
  0xb7   : > { %3241 = vmatpush3.bf16.xpose.msra.mxu1 %v3496_v13  ;;  %3210 = vmatprep.subr.bf16.mxu0 %v3497_v14 }
  0xb8   : > { %3242 = vmatprep.subr.bf16.mxu1 %v3498_v15 }
  0xbe   : > { %3211 = vmatpush3.bf16.xpose.msra.mxu0 %v3497_v14 }
  0xbf   : > { %3243 = vmatpush3.bf16.xpose.msra.mxu1 %v3498_v15  ;;  %3212 = vmatprep.subr.bf16.mxu0 %v3499_v16 }
  0xc0   : > { %3244 = vmatprep.subr.bf16.mxu1 %v3500_v17 }
  0xc6   : > { %3213 = vmatpush3.bf16.xpose.msra.mxu0 %v3499_v16 }
  0xc7   : > { %3245 = vmatpush3.bf16.xpose.msra.mxu1 %v3500_v17  ;;  %3214 = vmatprep.subr.bf16.mxu0 %v3501_v18 }
  0xc8   : > { %3246 = vmatprep.subr.bf16.mxu1 %v3502_v19 }
  0xce   : > { %3215 = vmatpush3.bf16.xpose.msra.mxu0 %v3501_v18 }
  0xcf   : > { %3247 = vmatpush3.bf16.xpose.msra.mxu1 %v3502_v19 }
  0xd5   : > { %3217 = vmatmul.mubr.bf16.vlgmr.msra.gmra.mrb[0].mxu0 %v3505_v20 }
  0xd6   : > { %3249 = vmatmul.mubr.bf16.vlgmr.msra.gmra.mrb[0].mxu1 %v3506_v21  ;;  %3220 = vmatprep.mubr.bf16.mxu0 %v3507_v22 }
  0xd7   : > { %3252 = vmatprep.mubr.bf16.mxu1 %v3509_v23 }
  0xdd   : > { %3221 = vmatmul.mubr.bf16.gmra.mrb[4].mxu0 %v3508_v24 }
  0xde   : > { %3253 = vmatmul.mubr.bf16.gmra.mrb[4].mxu1 %v3510_v25  ;;  %3224 = vmatprep.mubr.bf16.mxu0 %v3511_v26 }
  0xdf   : > { %3256 = vmatprep.mubr.bf16.mxu1 %v3513_v27 }
  0xe5   : > { %3225 = vmatmul.mubr.bf16.gmra.mrb[8].mxu0 %v3512_v28 }
  0xe6   : > { %3257 = vmatmul.mubr.bf16.gmra.mrb[8].mxu1 %v3514_v29  ;;  %3228 = vmatprep.mubr.bf16.mxu0 %v3515_v30 }
  0xe7   : > { %3260 = vmatprep.mubr.bf16.mxu1 %v3517_v31 }
  0xed   : > { %3229 = vmatmul.mubr.bf16.gmra.mrb[12].mxu0 %v3516_v32 }
  0xee   : > { %3261 = vmatmul.mubr.bf16.gmra.mrb[12].mxu1 %v3518_v33 }
 0x1a8   : > { %v3218_v34 = vpop.f32.mrb[0].mxu0 }
 0x1a9   : > { %v4260_v35 = vmul.f32 0.088388346, %v3218_v34  ;;  %v3250_v36 = vpop.f32.mrb[0].mxu1  ;;  %v653_v37 = vpop.f32.mrb[1].mxu0 }
 0x1aa   : > { %v4262_v38 = vmul.f32 0.088388346, %v3250_v36  ;;  %v846_v39 = vpop.f32.mrb[1].mxu1  ;;  %v3219_v40 = vpop.f32.mrb[2].mxu0  ;;  %v4267_v44 = vmul.f32 0.088388346, %v653_v37 }
 0x1ab   : > { %5149 = vst [vmem:[#allocation34_spill] sm:$0xff] %v4260_v35  ;;  %v4264_v41 = vmul.f32 0.088388346, %v3219_v40  ;;  %v3251_v42 = vpop.f32.mrb[2].mxu1  ;;  %977 = vmax.xlane.f32.xlu1 %v4260_v35  ;;  %v656_v43 = vpop.f32.mrb[3].mxu0  ;;  %v4356_v36 = vld [vmem:[#allocation2 + $0x10] sm:$0xff] }
 0x1ac   : > { %5150 = vst [vmem:[#allocation35_spill] sm:$0xff] %v4262_v38  ;;  %5152 = vst [vmem:[#allocation37_spill] sm:$0xff] %v4267_v44  ;;  %1009 = vmax.xlane.f32.xlu0 %v4262_v38  ;;  %v849_v45 = vpop.f32.mrb[3].mxu1  ;;  %v4272_v47 = vmul.f32 0.088388346, %v3251_v42  ;;  %v4358_v37 = vld [vmem:[#allocation2 + $0x90] sm:$0xff] }
 0x1ad   : > { %5151 = vst [vmem:[#allocation36_spill] sm:$0xff] %v4264_v41  ;;  %v4274_v50 = vmul.f32 0.088388346, %v846_v39  ;;  %v4278_v56 = vmul.f32 0.088388346, %v849_v45  ;;  %v4366_v45 = vld [vmem:[#allocation2 + $0x18] sm:$0xff] }
 0x1ae   : > { %5153 = vst [vmem:[#allocation38_spill] sm:$0xff] %v4272_v47  ;;  %v4280_v57 = vmul.f32 0.088388346, %v656_v43  ;;  %v4628_v35 = vld [vmem:[#allocation2 + $0xe8] sm:$0xff] }
 0x1af   : > { %979 = vmax.xlane.f32.xlu1 %v4264_v41  ;;  %5154 = vst [vmem:[#allocation39_spill] sm:$0xff] %v4274_v50  ;;  %5155 = vst [vmem:[#allocation40_spill] sm:$0xff] %v4278_v56  ;;  %v4612_v41 = vld [vmem:[#allocation2 + $0x60] sm:$0xff] }
 0x1b0   : > { %973 = vmax.xlane.f32.xlu0 %v4267_v44  ;;  %v3222_v46 = vpop.f32.mrb[4].mxu0  ;;  %5156 = vst [vmem:[#allocation41_spill] sm:$0xff] %v4280_v57  ;;  %5184 = vst [vmem:[#allocation69_spill] sm:$0xff] %v4612_v41  ;;  %v4632_v44 = vld [vmem:[#allocation2 + $0xe0] sm:$0xff] }
 0x1b1   : > { %v669_v48 = vpop.f32.mrb[5].mxu0  ;;  %v3254_v49 = vpop.f32.mrb[4].mxu1  ;;  %v4285_v59 = vmul.f32 0.088388346, %v3222_v46  ;;  %v3526_v46 = vld [vmem:[%s4095_s12 + $0x20] sm:$0xff]  }
 0x1b2   : > { %v3223_v51 = vpop.f32.mrb[6].mxu0  ;;  %v862_v52 = vpop.f32.mrb[5].mxu1  ;;  %v4291_v4 = vmul.f32 0.088388346, %v3254_v49  ;;  %v4297_v8 = vmul.f32 0.088388346, %v669_v48 }
 0x1b3   : > { %1011 = vmax.xlane.f32.xlu1 %v4272_v47  ;;  %v3255_v53 = vpop.f32.mrb[6].mxu1  ;;  %v672_v54 = vpop.f32.mrb[7].mxu0  ;;  %v4283_v58 = vmul.f32 0.088388346, %v3223_v51  ;;  %5158 = vst [vmem:[#allocation43_spill] sm:$0xff] %v4285_v59  ;;  %v4373_v48 = vld [vmem:[#allocation2] sm:$0xff] }
 0x1b4   : > { %1005 = vmax.xlane.f32.xlu0 %v4274_v50  ;;  %v865_v55 = vpop.f32.mrb[7].mxu1  ;;  %v4289_v1 = vmul.f32 0.088388346, %v3255_v53  ;;  %5160 = vst [vmem:[#allocation45_spill] sm:$0xff] %v4291_v4  ;;  %v4295_v7 = vmul.f32 0.088388346, %v672_v54 }
 0x1b5   : > { %5157 = vst [vmem:[#allocation42_spill] sm:$0xff] %v4283_v58  ;;  %5162 = vst [vmem:[#allocation47_spill] sm:$0xff] %v4297_v8  ;;  %v4301_v14 = vmul.f32 0.088388346, %v865_v55  ;;  %v4303_v17 = vmul.f32 0.088388346, %v862_v52 }
 0x1b6   : > { %5159 = vst [vmem:[#allocation44_spill] sm:$0xff] %v4289_v1  ;;  %5161 = vst [vmem:[#allocation46_spill] sm:$0xff] %v4295_v7  ;;  %v4386_v55 = vld [vmem:[#allocation2 + $0x98] sm:$0xff]  ;;  %v4606_v47 = vld [vmem:[#allocation2 + $0x68] sm:$0xff] }
 0x1b7   : > { %1007 = vmax.xlane.f32.xlu1 %v4278_v56  ;;  %5163 = vst [vmem:[#allocation48_spill] sm:$0xff] %v4301_v14  ;;  %5164 = vst [vmem:[#allocation49_spill] sm:$0xff] %v4303_v17 }
 0x1b8   : > { %975 = vmax.xlane.f32.xlu0 %v4280_v57  ;;  %v3226_v60 = vpop.f32.mrb[8].mxu0 }
 0x1b9   : > { %v685_v61 = vpop.f32.mrb[9].mxu0  ;;  %v3258_v62 = vpop.f32.mrb[8].mxu1  ;;  %v4310_v20 = vmul.f32 0.088388346, %v3226_v60  ;;  %v4390_v60 = vld [vmem:[#allocation2 + $0x80] sm:$0xff] }
 0x1ba   : > { %v3227_v63 = vpop.f32.mrb[10].mxu0  ;;  %v878_v0 = vpop.f32.mrb[9].mxu1  ;;  %v4315_v22 = vmul.f32 0.088388346, %v3258_v62  ;;  %v4321_v24 = vmul.f32 0.088388346, %v685_v61 }
 0x1bb   : > { %987 = vmax.xlane.f32.xlu1 %v4283_v58  ;;  %v3259_v2 = vpop.f32.mrb[10].mxu1  ;;  %v688_v3 = vpop.f32.mrb[11].mxu0  ;;  %v4307_v19 = vmul.f32 0.088388346, %v3227_v63  ;;  %5166 = vst [vmem:[#allocation51_spill] sm:$0xff] %v4310_v20  ;;  %v3519_v62 = vld [vmem:[%s4095_s12] sm:$0xff]  }
 0x1bc   : > { %985 = vmax.xlane.f32.xlu0 %v4285_v59  ;;  %v881_v5 = vpop.f32.mrb[11].mxu1  ;;  %v4313_v21 = vmul.f32 0.088388346, %v3259_v2  ;;  %5168 = vst [vmem:[#allocation53_spill] sm:$0xff] %v4315_v22  ;;  %v4319_v23 = vmul.f32 0.088388346, %v688_v3  ;;  %3264 = vmatprep.subr.bf16.mxu0 %v3519_v62 }
 0x1bd   : > { %5165 = vst [vmem:[#allocation50_spill] sm:$0xff] %v4307_v19  ;;  %5170 = vst [vmem:[#allocation55_spill] sm:$0xff] %v4321_v24  ;;  %v4325_v25 = vmul.f32 0.088388346, %v881_v5  ;;  %v4327_v26 = vmul.f32 0.088388346, %v878_v0  ;;  %3265 = vmatpush3.bf16.msra.mxu0 %v3519_v62 }
 0x1be   : > { %5167 = vst [vmem:[#allocation52_spill] sm:$0xff] %v4313_v21  ;;  %5169 = vst [vmem:[#allocation54_spill] sm:$0xff] %v4319_v23  ;;  %v4402_v3 = vld [vmem:[#allocation2 + $0x88] sm:$0xff]  ;;  %v4588_v59 = vld [vmem:[#allocation2 + $0xf8] sm:$0xff] }
 0x1bf   : > { %1019 = vmax.xlane.f32.xlu1 %v4289_v1  ;;  %5171 = vst [vmem:[#allocation56_spill] sm:$0xff] %v4325_v25  ;;  %5172 = vst [vmem:[#allocation57_spill] sm:$0xff] %v4327_v26  ;;  %v4457_v5 = vld [vmem:[#allocation2 + $0x28] sm:$0xff]  ;;  %v4592_v58 = vld [vmem:[#allocation2 + $0xf0] sm:$0xff] }
 0x1c0   : > { %1017 = vmax.xlane.f32.xlu0 %v4291_v4  ;;  %v3230_v9 = vpop.f32.mrb[12].mxu0  ;;  %v4552_v1 = vld [vmem:[#allocation2 + $0xc8] sm:$0xff]  ;;  %5182 = vst [vmem:[#allocation67_spill] sm:$0xff] %v4588_v59  ;;  %5183 = vst [vmem:[#allocation68_spill] sm:$0xff] %v4592_v58 }
 0x1c1   : > { %v701_v10 = vpop.f32.mrb[13].mxu0  ;;  %v3262_v11 = vpop.f32.mrb[12].mxu1  ;;  %v4333_v28 = vmul.f32 0.088388346, %v3230_v9 }
 0x1c2   : > { %v3231_v12 = vpop.f32.mrb[14].mxu0  ;;  %v894_v13 = vpop.f32.mrb[13].mxu1  ;;  %v4339_v30 = vmul.f32 0.088388346, %v3262_v11  ;;  %v4345_v32 = vmul.f32 0.088388346, %v701_v10 }
 0x1c3   : > { %983 = vmax.xlane.f32.xlu1 %v4295_v7  ;;  %v3263_v15 = vpop.f32.mrb[14].mxu1  ;;  %v704_v16 = vpop.f32.mrb[15].mxu0  ;;  %v4331_v27 = vmul.f32 0.088388346, %v3231_v12  ;;  %5174 = vst [vmem:[#allocation59_spill] sm:$0xff] %v4333_v28  ;;  %v3520_v11 = vld [vmem:[%s4095_s12 + $0x8] sm:$0xff]  }
 0x1c4   : > { %981 = vmax.xlane.f32.xlu0 %v4297_v8  ;;  %v897_v18 = vpop.f32.mrb[15].mxu1  ;;  %v4337_v29 = vmul.f32 0.088388346, %v3263_v15  ;;  %5176 = vst [vmem:[#allocation61_spill] sm:$0xff] %v4339_v30  ;;  %v4343_v31 = vmul.f32 0.088388346, %v704_v16  ;;  %3266 = vmatprep.subr.bf16.mxu0 %v3520_v11 }
 0x1c5   : > { %5173 = vst [vmem:[#allocation58_spill] sm:$0xff] %v4331_v27  ;;  %5178 = vst [vmem:[#allocation63_spill] sm:$0xff] %v4345_v32  ;;  %v4349_v33 = vmul.f32 0.088388346, %v897_v18  ;;  %v4351_v34 = vmul.f32 0.088388346, %v894_v13  ;;  %3267 = vmatpush3.bf16.msra.mxu0 %v3520_v11 }
 0x1c6   : > { %5175 = vst [vmem:[#allocation60_spill] sm:$0xff] %v4337_v29  ;;  %5177 = vst [vmem:[#allocation62_spill] sm:$0xff] %v4343_v31  ;;  %v3521_v12 = vld [vmem:[%s4095_s12 + $0x40] sm:$0xff]   ;;  %v4423_v18 = vld [vmem:[#allocation2 + $0x38] sm:$0xff] }
 0x1c7   : > { %1015 = vmax.xlane.f32.xlu1 %v4301_v14  ;;  %5179 = vst [vmem:[#allocation64_spill] sm:$0xff] %v4349_v33  ;;  %5180 = vst [vmem:[#allocation65_spill] sm:$0xff] %v4351_v34  ;;  %3296 = vmatprep.subr.bf16.mxu1 %v3521_v12  ;;  %v4444_v11 = vld [vmem:[#allocation2 + $0xb0] sm:$0xff]  ;;  %v3534_v14 = vld [vmem:[%s4095_s12 + $0x78] sm:$0xff]  }
 0x1c8   : > { %1013 = vmax.xlane.f32.xlu0 %v4303_v17  ;;  %3297 = vmatpush3.bf16.msra.mxu1 %v3521_v12  ;;  %v4570_v8 = vld [vmem:[#allocation2 + $0x78] sm:$0xff]  ;;  %v4574_v17 = vld [vmem:[#allocation2 + $0x70] sm:$0xff] }
 0x1c9   : > { %5181 = vst [vmem:[#allocation66_spill] sm:$0xff] %v4574_v17 }
 0x1cb   : > { %995 = vmax.xlane.f32.xlu1 %v4307_v19  ;;  %v3532_v19 = vld [vmem:[%s4095_s12 + $0x38] sm:$0xff]  }
 0x1cc   : > { %993 = vmax.xlane.f32.xlu0 %v4310_v20  ;;  %v4537_v20 = vld [vmem:[#allocation2 + $0x40] sm:$0xff] }
 0x1cf   : > { %1027 = vmax.xlane.f32.xlu1 %v4313_v21 }
 0x1d0   : > { %1025 = vmax.xlane.f32.xlu0 %v4315_v22  ;;  %v3533_v22 = vld [vmem:[%s4095_s12 + $0x70] sm:$0xff]  }
 0x1d3   : > { %991 = vmax.xlane.f32.xlu1 %v4319_v23 }
 0x1d4   : > { %989 = vmax.xlane.f32.xlu0 %v4321_v24 }
 0x1d7   : > { %1023 = vmax.xlane.f32.xlu1 %v4325_v25 }
 0x1d8   : > { %1021 = vmax.xlane.f32.xlu0 %v4327_v26  ;;  %v3531_v26 = vld [vmem:[%s4095_s12 + $0x68] sm:$0xff]  }
 0x1db   : > { %1003 = vmax.xlane.f32.xlu1 %v4331_v27 }
 0x1dc   : > { %1001 = vmax.xlane.f32.xlu0 %v4333_v28  ;;  %v4495_v28 = vld [vmem:[#allocation2 + $0x58] sm:$0xff] }
 0x1df   : > { %1035 = vmax.xlane.f32.xlu1 %v4337_v29  ;;  %v3528_v29 = vld [vmem:[%s4095_s12 + $0x28] sm:$0xff]  }
 0x1e0   : > { %1033 = vmax.xlane.f32.xlu0 %v4339_v30 }
 0x1e3   : > { %999 = vmax.xlane.f32.xlu1 %v4343_v31  ;;  %v3530_v31 = vld [vmem:[%s4095_s12 + $0x30] sm:$0xff]  }
 0x1e4   : > { %997 = vmax.xlane.f32.xlu0 %v4345_v32 }
 0x1e7   : > { %1031 = vmax.xlane.f32.xlu1 %v4349_v33 }
 0x1e8   : > { %1029 = vmax.xlane.f32.xlu0 %v4351_v34 }
 0x238   : > { %v978_v39 = vpop.xlane.xlu1 %977 }
 0x239   : > { %v1010_v40 = vpop.xlane.xlu0 %1009  ;;  %v4361_v42 = vmax.f32 %v4356_v36, %v978_v39  ;;  %v4427_v39 = vld [vmem:[#allocation2 + $0x30] sm:$0xff] }
 0x23a   : > { %v4364_v43 = vmax.f32 %v4358_v37, %v1010_v40 }
 0x23b   : > { %2242 = vst.msk [vmem:[#allocation2 + $0x10] sm:$0xff] %vm1581_vm1, %v4361_v42  ;;  %1177 = vperm.xlu1 %3485, %v4361_v42  }
 0x23c   : > { %2258 = vst.msk [vmem:[#allocation2 + $0x90] sm:$0xff] %vm1581_vm1, %v4364_v43  ;;  %1257 = vperm.xlu0 %3486, %v4364_v43   ;;  %v980_v51 = vpop.xlane.xlu1 %979 }
 0x23d   : > { %v974_v52 = vpop.xlane.xlu0 %973  ;;  %v4381_v53 = vmax.f32 %v4366_v45, %v980_v51  ;;  %v3522_v51 = vld [vmem:[%s4095_s12 + $0x10] sm:$0xff]  }
 0x23e   : > { %v4384_v54 = vmax.f32 %v4373_v48, %v974_v52  ;;  %v3523_v52 = vld [vmem:[%s4095_s12 + $0x48] sm:$0xff]   ;;  %3268 = vmatprep.subr.bf16.mxu0 %v3522_v51 }
 0x23f   : > { %2243 = vst.msk [vmem:[#allocation2 + $0x18] sm:$0xff] %vm1581_vm1, %v4381_v53  ;;  %3298 = vmatprep.subr.bf16.mxu1 %v3523_v52  ;;  %3269 = vmatpush3.bf16.msra.mxu0 %v3522_v51  ;;  %v3527_v51 = vld [vmem:[%s4095_s12 + $0x58] sm:$0xff]  }
 0x240   : > { %2240 = vst.msk [vmem:[#allocation2] sm:$0xff] %vm1581_vm1, %v4384_v54  ;;  %1167 = vperm.xlu0 %3486, %v4384_v54   ;;  %v1012_v61 = vpop.xlane.xlu1 %1011  ;;  %3299 = vmatpush3.bf16.msra.mxu1 %v3523_v52  ;;  %v4463_v52 = vld [vmem:[#allocation2 + $0x20] sm:$0xff] }
 0x241   : > { %v1006_v63 = vpop.xlane.xlu0 %1005  ;;  %v4397_v0 = vmax.f32 %v4386_v55, %v1012_v61 }
 0x242   : > { %v4400_v2 = vmax.f32 %v4390_v60, %v1006_v63 }
 0x243   : > { %2259 = vst.msk [vmem:[#allocation2 + $0x98] sm:$0xff] %vm1581_vm1, %v4397_v0 }
 0x244   : > { %2256 = vst.msk [vmem:[#allocation2 + $0x80] sm:$0xff] %vm1581_vm1, %v4400_v2  ;;  %1247 = vperm.xlu1 %3485, %v4400_v2   ;;  %v1008_v10 = vpop.xlane.xlu1 %1007 }
 0x245   : > { %v4418_v13 = vmax.f32 %v4402_v3, %v1008_v10  ;;  %v976_v15 = vpop.xlane.xlu0 %975  ;;  %v4440_v10 = vld [vmem:[#allocation2 + $0xb8] sm:$0xff] }
 0x246   : > { %v4421_v16 = vmax.f32 %v4408_v6, %v976_v15  ;;  %v3524_v15 = vld [vmem:[%s4095_s12 + $0x18] sm:$0xff]  }
 0x247   : > { %2257 = vst.msk [vmem:[#allocation2 + $0x88] sm:$0xff] %vm1581_vm1, %v4418_v13  ;;  %3270 = vmatprep.subr.bf16.mxu0 %v3524_v15 }
 0x248   : > { %2241 = vst.msk [vmem:[#allocation2 + $0x8] sm:$0xff] %vm1581_vm1, %v4421_v16  ;;  %1182 = vperm.xlu1 %3485, %v4381_v53   ;;  %v988_v40 = vpop.xlane.xlu1 %987  ;;  %3271 = vmatpush3.bf16.msra.mxu0 %v3524_v15 }
 0x249   : > { %v986_v61 = vpop.xlane.xlu0 %985  ;;  %v4435_v62 = vmax.f32 %v4423_v18, %v988_v40  ;;  %v3525_v40 = vld [vmem:[%s4095_s12 + $0x50] sm:$0xff]   ;;  %3272 = vmatprep.subr.bf16.mxu0 %v3526_v46 }
 0x24a   : > { %v4438_v63 = vmax.f32 %v4427_v39, %v986_v61  ;;  %3300 = vmatprep.subr.bf16.mxu1 %v3525_v40 }
 0x24b   : > { %2247 = vst.msk [vmem:[#allocation2 + $0x38] sm:$0xff] %vm1581_vm1, %v4435_v62  ;;  %3301 = vmatpush3.bf16.msra.mxu1 %v3525_v40  ;;  %v4478_v40 = vld [vmem:[#allocation2 + $0xa8] sm:$0xff] }
 0x24c   : > { %2246 = vst.msk [vmem:[#allocation2 + $0x30] sm:$0xff] %vm1581_vm1, %v4438_v63  ;;  %1262 = vperm.xlu1 %3485, %v4397_v0   ;;  %v1020_v12 = vpop.xlane.xlu1 %1019  ;;  %3302 = vmatprep.subr.bf16.mxu1 %v3527_v51 }
 0x24d   : > { %v1018_v61 = vpop.xlane.xlu0 %1017  ;;  %v4452_v49 = vmax.f32 %v4440_v10, %v1020_v12  ;;  %v4482_v12 = vld [vmem:[#allocation2 + $0xa0] sm:$0xff]  ;;  %3273 = vmatpush3.bf16.msra.mxu0 %v3526_v46  ;;  %v4499_v46 = vld [vmem:[#allocation2 + $0x50] sm:$0xff] }
 0x24e   : > { %v4455_v9 = vmax.f32 %v4444_v11, %v1018_v61  ;;  %3274 = vmatprep.subr.bf16.mxu0 %v3528_v29 }
 0x24f   : > { %2263 = vst.msk [vmem:[#allocation2 + $0xb8] sm:$0xff] %vm1581_vm1, %v4452_v49  ;;  %3303 = vmatpush3.bf16.msra.mxu1 %v3527_v51 }
 0x250   : > { %2262 = vst.msk [vmem:[#allocation2 + $0xb0] sm:$0xff] %vm1581_vm1, %v4455_v9  ;;  %1172 = vperm.xlu1 %3485, %v4421_v16   ;;  %v984_v61 = vpop.xlane.xlu1 %983 }
 0x251   : > { %v982_v30 = vpop.xlane.xlu0 %981  ;;  %v4473_v34 = vmax.f32 %v4457_v5, %v984_v61  ;;  %3275 = vmatpush3.bf16.msra.mxu0 %v3528_v29  ;;  %v4513_v29 = vld [vmem:[#allocation2 + $0xd8] sm:$0xff] }
 0x252   : > { %v4476_v15 = vmax.f32 %v4463_v52, %v982_v30  ;;  %v3529_v30 = vld [vmem:[%s4095_s12 + $0x60] sm:$0xff]   ;;  %3276 = vmatprep.subr.bf16.mxu0 %v3530_v31 }
 0x253   : > { %2245 = vst.msk [vmem:[#allocation2 + $0x28] sm:$0xff] %vm1581_vm1, %v4473_v34  ;;  %3304 = vmatprep.subr.bf16.mxu1 %v3529_v30 }
 0x254   : > { %2244 = vst.msk [vmem:[#allocation2 + $0x20] sm:$0xff] %vm1581_vm1, %v4476_v15  ;;  %1252 = vperm.xlu1 %3485, %v4418_v13   ;;  %v1016_v61 = vpop.xlane.xlu1 %1015  ;;  %3305 = vmatpush3.bf16.msra.mxu1 %v3529_v30  ;;  %v4517_v30 = vld [vmem:[#allocation2 + $0xd0] sm:$0xff] }
 0x255   : > { %v1014_v32 = vpop.xlane.xlu0 %1013  ;;  %v4490_v33 = vmax.f32 %v4478_v40, %v1016_v61  ;;  %3306 = vmatprep.subr.bf16.mxu1 %v3531_v26  ;;  %3277 = vmatpush3.bf16.msra.mxu0 %v3530_v31 }
 0x256   : > { %v4493_v27 = vmax.f32 %v4482_v12, %v1014_v32  ;;  %3278 = vmatprep.subr.bf16.mxu0 %v3532_v19 }
 0x257   : > { %2261 = vst.msk [vmem:[#allocation2 + $0xa8] sm:$0xff] %vm1581_vm1, %v4490_v33 }
 0x258   : > { %2260 = vst.msk [vmem:[#allocation2 + $0xa0] sm:$0xff] %vm1581_vm1, %v4493_v27  ;;  %1267 = vperm.xlu0 %3486, %v4493_v27   ;;  %1197 = vperm.xlu1 %3485, %v4438_v63   ;;  %v996_v32 = vpop.xlane.xlu1 %995 }
 0x259   : > { %v994_v51 = vpop.xlane.xlu0 %993  ;;  %v4506_v61 = vmax.f32 %v4495_v28, %v996_v32  ;;  %3307 = vmatpush3.bf16.msra.mxu1 %v3531_v26  ;;  %v4533_v32 = vld [vmem:[#allocation2 + $0x48] sm:$0xff]  ;;  %3279 = vmatpush3.bf16.msra.mxu0 %v3532_v19 }
 0x25a   : > { %v4511_v21 = vmax.f32 %v4499_v46, %v994_v51  ;;  %3308 = vmatprep.subr.bf16.mxu1 %v3533_v22 }
 0x25b   : > { %2251 = vst.msk [vmem:[#allocation2 + $0x58] sm:$0xff] %vm1581_vm1, %v4506_v61 }
 0x25c   : > { %2250 = vst.msk [vmem:[#allocation2 + $0x50] sm:$0xff] %vm1581_vm1, %v4511_v21  ;;  %1202 = vperm.xlu0 %3486, %v4435_v62   ;;  %1277 = vperm.xlu1 %3485, %v4455_v9   ;;  %v1028_v51 = vpop.xlane.xlu1 %1027 }
 0x25d   : > { %v1026_v24 = vpop.xlane.xlu0 %1025  ;;  %v4526_v25 = vmax.f32 %v4513_v29, %v1028_v51  ;;  %3309 = vmatpush3.bf16.msra.mxu1 %v3533_v22  ;;  %v4556_v51 = vld [vmem:[#allocation2 + $0xc0] sm:$0xff] }
 0x25e   : > { %v4531_v23 = vmax.f32 %v4517_v30, %v1026_v24  ;;  %3310 = vmatprep.subr.bf16.mxu1 %v3534_v14 }
 0x25f   : > { %2267 = vst.msk [vmem:[#allocation2 + $0xd8] sm:$0xff] %vm1581_vm1, %v4526_v25 }
 0x260   : > { %2266 = vst.msk [vmem:[#allocation2 + $0xd0] sm:$0xff] %vm1581_vm1, %v4531_v23  ;;  %1282 = vperm.xlu0 %3486, %v4452_v49   ;;  %1187 = vperm.xlu1 %3485, %v4476_v15   ;;  %v992_v24 = vpop.xlane.xlu1 %991 }
 0x261   : > { %v990_v26 = vpop.xlane.xlu0 %989  ;;  %v4546_v31 = vmax.f32 %v4533_v32, %v992_v24  ;;  %3311 = vmatpush3.bf16.msra.mxu1 %v3534_v14 }
 0x262   : > { %v4550_v7 = vmax.f32 %v4537_v20, %v990_v26 }
 0x263   : > { %2249 = vst.msk [vmem:[#allocation2 + $0x48] sm:$0xff] %vm1581_vm1, %v4546_v31 }
 0x264   : > { %2248 = vst.msk [vmem:[#allocation2 + $0x40] sm:$0xff] %vm1581_vm1, %v4550_v7  ;;  %1222 = vperm.xlu0 %3486, %v4506_v61   ;;  %1192 = vperm.xlu1 %3485, %v4473_v34   ;;  %v1024_v19 = vpop.xlane.xlu1 %1023 }
 0x265   : > { %v1022_v22 = vpop.xlane.xlu0 %1021  ;;  %v4565_v24 = vmax.f32 %v4552_v1, %v1024_v19 }
 0x266   : > { %v4568_v26 = vmax.f32 %v4556_v51, %v1022_v22 }
 0x267   : > { %2265 = vst.msk [vmem:[#allocation2 + $0xc8] sm:$0xff] %vm1581_vm1, %v4565_v24 }
 0x268   : > { %2264 = vst.msk [vmem:[#allocation2 + $0xc0] sm:$0xff] %vm1581_vm1, %v4568_v26  ;;  %1302 = vperm.xlu0 %3486, %v4526_v25   ;;  %1272 = vperm.xlu1 %3485, %v4490_v33   ;;  %v1004_v14 = vpop.xlane.xlu1 %1003 }
 0x269   : > { %v1002_v19 = vpop.xlane.xlu0 %1001  ;;  %v4583_v22 = vmax.f32 %v4570_v8, %v1004_v14 }
 0x26a   : > { %v4586_v4 = vmax.f32 %v4574_v17, %v1002_v19  ;;  %v1070_v17 = vsub.f32 %v4408_v6, %v4421_v16  ;;  %v1076_v6 = vsub.f32 %v4423_v18, %v4435_v62 }
 0x26b   : > { %2255 = vst.msk [vmem:[#allocation2 + $0x78] sm:$0xff] %vm1581_vm1, %v4583_v22 }
 0x26c   : > { %2254 = vst.msk [vmem:[#allocation2 + $0x70] sm:$0xff] %vm1581_vm1, %v4586_v4  ;;  %1212 = vperm.xlu0 %3486, %v4546_v31   ;;  %1217 = vperm.xlu1 %3485, %v4511_v21   ;;  %v1036_v14 = vpop.xlane.xlu1 %1035 }
 0x26d   : > { %v1034_v19 = vpop.xlane.xlu0 %1033  ;;  %v4601_v57 = vmax.f32 %v4588_v59, %v1036_v14 }
 0x26e   : > { %v4604_v50 = vmax.f32 %v4592_v58, %v1034_v19  ;;  %v1069_v19 = vsub.f32 %v4373_v48, %v4384_v54 }
 0x26f   : > { %2271 = vst.msk [vmem:[#allocation2 + $0xf8] sm:$0xff] %vm1581_vm1, %v4601_v57 }
 0x270   : > { %2270 = vst.msk [vmem:[#allocation2 + $0xf0] sm:$0xff] %vm1581_vm1, %v4604_v50  ;;  %1292 = vperm.xlu0 %3486, %v4565_v24   ;;  %1297 = vperm.xlu1 %3485, %v4531_v23   ;;  %v1000_v14 = vpop.xlane.xlu1 %999  ;;  %v1101_v54 = vmul.f32 1.442695, %v1069_v19  ;;  %v1103_v19 = vmul.f32 1.442695, %v1070_v17 }
 0x271   : > { %v998_v56 = vpop.xlane.xlu0 %997  ;;  %v4623_v59 = vmax.f32 %v4606_v47, %v1000_v14  ;;  %v1115_v17 = vmul.f32 1.442695, %v1076_v6  ;;  %v1080_v6 = vsub.f32 %v4495_v28, %v4506_v61  ;;  %v5190_v28 = vsub.f32 %v4444_v11, %v4455_v9 }
 0x272   : > { %v4626_v38 = vmax.f32 %v4612_v41, %v998_v56  ;;  %v1072_v56 = vsub.f32 %v4366_v45, %v4381_v53  ;;  %3535 = vpow2.f32 %v1101_v54  ;;  %v1074_v53 = vsub.f32 %v4457_v5, %v4473_v34 }
 0x273   : > { %2253 = vst.msk [vmem:[#allocation2 + $0x68] sm:$0xff] %vm1581_vm1, %v4623_v59  ;;  %v1086_v54 = vsub.f32 %v4402_v3, %v4418_v13  ;;  %v1073_v34 = vsub.f32 %v4463_v52, %v4476_v15  ;;  %v5186_v13 = vsub.f32 %v4386_v55, %v4397_v0  ;;  %v1090_v15 = vsub.f32 %v4478_v40, %v4490_v33 }
 0x274   : > { %2252 = vst.msk [vmem:[#allocation2 + $0x60] sm:$0xff] %vm1581_vm1, %v4626_v38  ;;  %1242 = vperm.xlu0 %3486, %v4583_v22   ;;  %1207 = vperm.xlu1 %3485, %v4550_v7   ;;  %v1032_v48 = vpop.xlane.xlu1 %1031  ;;  %v1107_v45 = vmul.f32 1.442695, %v1072_v56  ;;  %v1111_v16 = vmul.f32 1.442695, %v1074_v53  ;;  %v5188_v33 = vsub.f32 %v4358_v37, %v4364_v43 }
 0x275   : > { %v1030_v14 = vpop.xlane.xlu0 %1029  ;;  %v4641_v58 = vmax.f32 %v4628_v35, %v1032_v48  ;;  %v5185_v48 = vsub.f32 %v4356_v36, %v4361_v42  ;;  %v1135_v18 = vmul.f32 1.442695, %v1086_v54  ;;  %v1075_v36 = vsub.f32 %v4427_v39, %v4438_v63 }
 0x276   : > { %v4644_v41 = vmax.f32 %v4632_v44, %v1030_v14  ;;  %3537 = vpow2.f32 %v1107_v45  ;;  %v1109_v42 = vmul.f32 1.442695, %v1073_v34  ;;  %v1139_v62 = vmul.f32 1.442695, %v5186_v13 }
 0x277   : > { %2269 = vst.msk [vmem:[#allocation2 + $0xe8] sm:$0xff] %vm1581_vm1, %v4641_v58  ;;  %v1105_v14 = vmul.f32 1.442695, %v5185_v48  ;;  %3539 = vpow2.f32 %v1103_v19  ;;  %v1113_v52 = vmul.f32 1.442695, %v1075_v36  ;;  %v5187_v63 = vsub.f32 %v4390_v60, %v4400_v2 }
 0x278   : > { %2268 = vst.msk [vmem:[#allocation2 + $0xe0] sm:$0xff] %vm1581_vm1, %v4644_v41  ;;  %1287 = vperm.xlu1 %3485, %v4568_v26   ;;  %1232 = vperm.xlu0 %3486, %v4623_v59   ;;  %3541 = vpow2.f32 %v1111_v16  ;;  %v1143_v55 = vmul.f32 1.442695, %v1090_v15  ;;  %v1137_v40 = vmul.f32 1.442695, %v5188_v33  ;;  %v1089_v60 = vsub.f32 %v4482_v12, %v4493_v27 }
 0x279   : > { %3543 = vpow2.f32 %v1105_v14  ;;  %v1133_v45 = vmul.f32 1.442695, %v5187_v63  ;;  %v5189_v2 = vsub.f32 %v4440_v10, %v4452_v49  ;;  %v1123_v27 = vmul.f32 1.442695, %v1080_v6 }
 0x27a   : > { %3545 = vpow2.f32 %v1115_v17  ;;  %v1141_v43 = vmul.f32 1.442695, %v1089_v60  ;;  %v1096_v49 = vsub.f32 %v4513_v29, %v4526_v25  ;;  %v1145_v61 = vmul.f32 1.442695, %v5190_v28 }
 0x27b   : > { %3547 = vpow2.f32 %v1135_v18  ;;  %v1147_v19 = vmul.f32 1.442695, %v5189_v2  ;;  %v1078_v14 = vsub.f32 %v4533_v32, %v4546_v31  ;;  %v5191_v29 = vsub.f32 %v4499_v46, %v4511_v21 }
 0x27c   : > { %1237 = vperm.xlu1 %3485, %v4586_v4   ;;  %1312 = vperm.xlu0 %3486, %v4641_v58   ;;  %v4669_v5 = vpop.eup %3535  ;;  %3549 = vpow2.f32 %v1109_v42  ;;  %v1155_v48 = vmul.f32 1.442695, %v1096_v49  ;;  %v1094_v17 = vsub.f32 %v4552_v1, %v4565_v24  ;;  %v5192_v31 = vsub.f32 %v4517_v30, %v4531_v23 }
 0x27d   : > { %3551 = vpow2.f32 %v1139_v62  ;;  %v1121_v9 = vmul.f32 1.442695, %v5191_v29  ;;  %v1119_v11 = vmul.f32 1.442695, %v1078_v14  ;;  %v1084_v46 = vsub.f32 %v4570_v8, %v4583_v22  ;;  %v5199_v29 = vld [vmem:[#allocation35_spill] sm:$0xff] }
 0x27e   : > { %3553 = vpow2.f32 %v1113_v52  ;;  %v1153_v18 = vmul.f32 1.442695, %v5192_v31  ;;  %v1151_v21 = vmul.f32 1.442695, %v1094_v17  ;;  %v5193_v24 = vsub.f32 %v4537_v20, %v4550_v7  ;;  %v5201_v31 = vld [vmem:[#allocation36_spill] sm:$0xff] }
 0x27f   : > { %3555 = vpow2.f32 %v1133_v45  ;;  %v1131_v23 = vmul.f32 1.442695, %v1084_v46  ;;  %v1082_v30 = vsub.f32 %v4606_v47, %v4623_v59  ;;  %v5194_v22 = vsub.f32 %v4556_v51, %v4568_v26  ;;  %v5195_v59 = vld [vmem:[#allocation66_spill] sm:$0xff]  ;;  %v5197_v51 = vld [vmem:[#allocation69_spill] sm:$0xff] }
 0x280   : > { %1227 = vperm.xlu1 %3485, %v4626_v38   ;;  %1322 = vperm.xlu0 %3486, %v4601_v57   ;;  %v4675_v3 = vpop.eup %3537  ;;  %3557 = vpow2.f32 %v1143_v55  ;;  %v1117_v42 = vmul.f32 1.442695, %v5193_v24  ;;  %v1098_v20 = vsub.f32 %v4628_v35, %v4641_v58  ;;  %v5196_v15 = vsub.f32 %v5195_v59, %v4586_v4  ;;  %v5204_v59 = vld [vmem:[#allocation41_spill] sm:$0xff] }
 0x281   : > { %v4684_v56 = vpop.eup %3539  ;;  %3559 = vpow2.f32 %v1137_v40  ;;  %v1149_v62 = vmul.f32 1.442695, %v5194_v22  ;;  %v1127_v7 = vmul.f32 1.442695, %v1082_v30  ;;  %v1081_v26 = vsub.f32 %v5197_v51, %v4626_v38  ;;  %v5203_v22 = vld [vmem:[#allocation39_spill] sm:$0xff] }
 0x282   : > { %v4686_v39 = vpop.eup %3541  ;;  %3561 = vpow2.f32 %v1147_v19  ;;  %v1129_v63 = vmul.f32 1.442695, %v5196_v15  ;;  %v1159_v45 = vmul.f32 1.442695, %v1098_v20  ;;  %v1097_v4 = vsub.f32 %v4632_v44, %v4644_v41 }
 0x283   : > { %v4693_v0 = vpop.eup %3543  ;;  %3563 = vpow2.f32 %v1141_v43  ;;  %v1125_v58 = vmul.f32 1.442695, %v1081_v26 }
 0x284   : > { %1307 = vperm.xlu1 %3485, %v4644_v41   ;;  %1648 = vperm.xlu0 %3486, %v4669_v5   ;;  %v4695_v53 = vpop.eup %3545  ;;  %3565 = vpow2.f32 %v1123_v27  ;;  %v1157_v38 = vmul.f32 1.442695, %v1097_v4 }
 0x285   : > { %v4709_v16 = vpop.eup %3547  ;;  %3567 = vpow2.f32 %v1145_v61 }
 0x286   : > { %v4711_v37 = vpop.eup %3549  ;;  %3569 = vpow2.f32 %v1155_v48  ;;  %v5198_v48 = vld [vmem:[#allocation34_spill] sm:$0xff] }
 0x287   : > { %v4717_v10 = vpop.eup %3551  ;;  %3571 = vpow2.f32 %v1121_v9 }
 0x288   : > { %1317 = vperm.xlu1 %3485, %v4604_v50   ;;  %1663 = vperm.xlu0 %3486, %v4675_v3   ;;  %v4719_v12 = vpop.eup %3553  ;;  %3573 = vpow2.f32 %v1119_v11  ;;  %v5200_v11 = vld [vmem:[#allocation37_spill] sm:$0xff] }
 0x289   : > { %v4728_v54 = vpop.eup %3555  ;;  %3575 = vpow2.f32 %v1153_v18 }
 0x28a   : > { %v4730_v25 = vpop.eup %3557  ;;  %3577 = vpow2.f32 %v1151_v21 }
 0x28b   : > { %v4739_v34 = vpop.eup %3559  ;;  %3579 = vpow2.f32 %v1117_v42 }
 0x28c   : > { %1653 = vperm.xlu1 %3485, %v4684_v56   ;;  %1673 = vperm.xlu0 %3486, %v4686_v39   ;;  %v4741_v32 = vpop.eup %3561  ;;  %3581 = vpow2.f32 %v1131_v23  ;;  %v5202_v23 = vld [vmem:[#allocation38_spill] sm:$0xff] }
 0x28d   : > { %v4750_v36 = vpop.eup %3563  ;;  %3583 = vpow2.f32 %v1149_v62 }
 0x28e   : > { %v4752_v1 = vpop.eup %3565  ;;  %3585 = vpow2.f32 %v1127_v7 }
 0x28f   : > { %v4761_v13 = vpop.eup %3567  ;;  %3587 = vpow2.f32 %v1129_v63 }
 0x290   : > { %1658 = vperm.xlu1 %3485, %v4693_v0   ;;  %1683 = vperm.xlu0 %3486, %v4695_v53   ;;  %v4763_v8 = vpop.eup %3569  ;;  %3589 = vpow2.f32 %v1159_v45 }
 0x291   : > { %v4772_v52 = vpop.eup %3571  ;;  %3591 = vpow2.f32 %v1125_v58  ;;  %v5205_v58 = vld [vmem:[#allocation40_spill] sm:$0xff] }
 0x292   : > { %v4774_v47 = vpop.eup %3573  ;;  %3593 = vpow2.f32 %v1157_v38 }
 0x293   : > { %v4783_v55 = vpop.eup %3575 }
 0x294   : > { %1668 = vperm.xlu1 %3485, %v4711_v37   ;;  %1733 = vperm.xlu0 %3486, %v4709_v16   ;;  %v4785_v35 = vpop.eup %3577 }
 0x295   : > { %v4791_v33 = vpop.eup %3579 }
 0x296   : > { %v4793_v40 = vpop.eup %3581 }
 0x297   : > { %v4797_v60 = vpop.eup %3583 }
 0x298   : > { %1678 = vperm.xlu1 %3485, %v4719_v12   ;;  %1743 = vperm.xlu0 %3486, %v4717_v10   ;;  %v4799_v2 = vpop.eup %3585 }
 0x299   : > { %v4803_v41 = vpop.eup %3587 }
 0x29a   : > { %v4805_v44 = vpop.eup %3589 }
 0x29b   : > { %v4809_v19 = vpop.eup %3591 }
 0x29c   : > { %1728 = vperm.xlu1 %3485, %v4728_v54   ;;  %1753 = vperm.xlu0 %3486, %v4730_v25   ;;  %v4812_v27 = vpop.eup %3593 }
 0x2a0   : > { %1738 = vperm.xlu1 %3485, %v4739_v34   ;;  %1763 = vperm.xlu0 %3486, %v4741_v32  }
 0x2a4   : > { %1748 = vperm.xlu1 %3485, %v4750_v36   ;;  %1703 = vperm.xlu0 %3486, %v4752_v1  }
 0x2a8   : > { %1758 = vperm.xlu1 %3485, %v4761_v13   ;;  %1783 = vperm.xlu0 %3486, %v4763_v8  }
 0x2ac   : > { %1698 = vperm.xlu1 %3485, %v4772_v52   ;;  %1693 = vperm.xlu0 %3486, %v4774_v47  }
 0x2b0   : > { %1778 = vperm.xlu1 %3485, %v4783_v55   ;;  %1773 = vperm.xlu0 %3486, %v4785_v35  }
 0x2b4   : > { %1688 = vperm.xlu1 %3485, %v4791_v33   ;;  %1723 = vperm.xlu0 %3486, %v4793_v40  }
 0x2b8   : > { %1768 = vperm.xlu1 %3485, %v4797_v60   ;;  %1713 = vperm.xlu0 %3486, %v4799_v2  }
 0x2ba   : > { %v1178_v6 = vpop.permute.xlu1 %1177 }
 0x2bb   : > { %v1258_v43 = vpop.permute.xlu0 %1257  ;;  %v1327_v14 = vsub.f32 %v5198_v48, %v1178_v6 }
 0x2bc   : > { %1718 = vperm.xlu1 %3485, %v4803_v41   ;;  %1793 = vperm.xlu0 %3486, %v4805_v44   ;;  %v1343_v9 = vsub.f32 %v5199_v29, %v1258_v43 }
 0x2bd   : > { %v1361_v46 = vmul.f32 1.442695, %v1327_v14 }
 0x2be   : > { %v1393_v24 = vmul.f32 1.442695, %v1343_v9 }
 0x2bf   : > { %v1168_v28 = vpop.permute.xlu0 %1167  ;;  %3595 = vpow2.f32 %v1361_v46  ;;  %v5208_v46 = vld [vmem:[#allocation42_spill] sm:$0xff] }
 0x2c0   : > { %1708 = vperm.xlu1 %3485, %v4809_v19   ;;  %v1325_v17 = vsub.f32 %v5200_v11, %v1168_v28  ;;  %3597 = vpow2.f32 %v1393_v24 }
 0x2c2   : > { %v1357_v42 = vmul.f32 1.442695, %v1325_v17  ;;  %v5207_v17 = vld [vmem:[#allocation45_spill] sm:$0xff] }
 0x2c3   : > { %v1248_v49 = vpop.permute.xlu1 %1247 }
 0x2c4   : > { %1788 = vperm.xlu1 %3485, %v4812_v27   ;;  %v1341_v62 = vsub.f32 %v5203_v22, %v1248_v49  ;;  %3599 = vpow2.f32 %v1357_v42  ;;  %v5206_v49 = vld [vmem:[#allocation43_spill] sm:$0xff] }
 0x2c6   : > { %v1389_v26 = vmul.f32 1.442695, %v1341_v62 }
 0x2c7   : > { %v1183_v61 = vpop.permute.xlu1 %1182 }
 0x2c8   : > { %v1328_v18 = vsub.f32 %v5201_v31, %v1183_v61 }
 0x2c9   : > { %v3596_v61 = vpop.eup %3595 }
 0x2ca   : > { %v1363_v7 = vmul.f32 1.442695, %v1328_v18  ;;  %v3598_v48 = vpop.eup %3597 }
 0x2cb   : > { %v1263_v21 = vpop.permute.xlu1 %1262 }
 0x2cc   : > { %v1344_v30 = vsub.f32 %v5202_v23, %v1263_v21  ;;  %3601 = vpow2.f32 %v1363_v7  ;;  %v5209_v7 = vld [vmem:[#allocation47_spill] sm:$0xff] }
 0x2ce   : > { %v1395_v63 = vmul.f32 1.442695, %v1344_v30  ;;  %v3600_v9 = vpop.eup %3599 }
 0x2cf   : > { %v1173_v20 = vpop.permute.xlu1 %1172 }
 0x2d0   : > { %v1326_v15 = vsub.f32 %v5204_v59, %v1173_v20 }
 0x2d2   : > { %v1359_v51 = vmul.f32 1.442695, %v1326_v15 }
 0x2d3   : > { %v1253_v45 = vpop.permute.xlu1 %1252 }
 0x2d4   : > { %3603 = vpow2.f32 %v1359_v51  ;;  %v1342_v4 = vsub.f32 %v5205_v58, %v1253_v45  ;;  %v5210_v51 = vld [vmem:[#allocation49_spill] sm:$0xff] }
 0x2d5   : > { %3605 = vpow2.f32 %v1395_v63 }
 0x2d6   : > { %v1391_v38 = vmul.f32 1.442695, %v1342_v4  ;;  %3607 = vpow2.f32 %v1389_v26  ;;  %v3602_v18 = vpop.eup %3601 }
 0x2d7   : > { %v1268_v6 = vpop.permute.xlu0 %1267  ;;  %v1198_v43 = vpop.permute.xlu1 %1197  ;;  %v1839_v59 = vpack.c.bf16 %v3602_v18, %v3596_v61 }
 0x2d8   : > { %3609 = vpow2.f32 %v1391_v38  ;;  %v1331_v28 = vsub.f32 %v5206_v49, %v1198_v43  ;;  %v1345_v26 = vsub.f32 %v5210_v51, %v1268_v6  ;;  %v5211_v49 = vld [vmem:[#allocation44_spill] sm:$0xff] }
 0x2da   : > { %v1369_v11 = vmul.f32 1.442695, %v1331_v28 }
 0x2db   : > { %v1203_v14 = vpop.permute.xlu0 %1202  ;;  %1489 = vadd.xlane.f32.xlu0 %v3596_v61  ;;  %v1278_v29 = vpop.permute.xlu1 %1277 }
 0x2dc   : > { %v1347_v31 = vsub.f32 %v5207_v17, %v1278_v29  ;;  %v1332_v24 = vsub.f32 %v5208_v46, %v1203_v14  ;;  %3611 = vpow2.f32 %v1369_v11  ;;  %v5212_v29 = vld [vmem:[#allocation46_spill] sm:$0xff]  ;;  %v1397_v17 = vmul.f32 1.442695, %v1345_v26 }
 0x2dd   : > { %v5215_v26 = vld [vmem:[#allocation54_spill] sm:$0xff] }
 0x2de   : > { %v3604_v21 = vpop.eup %3603  ;;  %v1401_v62 = vmul.f32 1.442695, %v1347_v31  ;;  %v1371_v45 = vmul.f32 1.442695, %v1332_v24  ;;  %v5213_v24 = vld [vmem:[#allocation48_spill] sm:$0xff] }
 0x2df   : > { %v1283_v42 = vpop.permute.xlu0 %1282  ;;  %1521 = vadd.xlane.f32.xlu0 %v3598_v48  ;;  %v1188_v23 = vpop.permute.xlu1 %1187  ;;  %v1838_v30 = vpack.c.bf16 %v3604_v21, %v3600_v9 }
 0x2e0   : > { %v3606_v22 = vpop.eup %3605  ;;  %v1329_v20 = vsub.f32 %v5209_v7, %v1188_v23  ;;  %3613 = vpow2.f32 %v1401_v62  ;;  %v1348_v28 = vsub.f32 %v5211_v49, %v1283_v42  ;;  %v5214_v7 = vld [vmem:[#allocation51_spill] sm:$0xff]  ;;  %v5217_v49 = vld [vmem:[#allocation50_spill] sm:$0xff] }
 0x2e1   : > { %v3608_v15 = vpop.eup %3607  ;;  %3280 = vmatprep.mubr.bf16.mxu0 %v1838_v30  ;;  %v1847_v43 = vpack.c.bf16 %v3606_v22, %v3598_v48  ;;  %3615 = vpow2.f32 %v1371_v45 }
 0x2e2   : > { %v3610_v63 = vpop.eup %3609  ;;  %3281 = vmatmul.mubr.bf16.vlgmr.msra.gmra.mrb[16].mxu0 %v1839_v59  ;;  %v1365_v14 = vmul.f32 1.442695, %v1329_v20  ;;  %v1403_v46 = vmul.f32 1.442695, %v1348_v28 }
 0x2e3   : > { %v1223_v58 = vpop.permute.xlu0 %1222  ;;  %1517 = vadd.xlane.f32.xlu0 %v3608_v15  ;;  %v1193_v4 = vpop.permute.xlu1 %1192  ;;  %v1846_v38 = vpack.c.bf16 %v3610_v63, %v3608_v15 }
 0x2e4   : > { %v1330_v11 = vsub.f32 %v5212_v29, %v1193_v4  ;;  %3617 = vpow2.f32 %v1365_v14  ;;  %v1336_v28 = vsub.f32 %v5217_v49, %v1223_v58 }
 0x2e5   : > { %3312 = vmatprep.mubr.bf16.mxu1 %v1846_v38 }
 0x2e6   : > { %v1367_v61 = vmul.f32 1.442695, %v1330_v11  ;;  %3313 = vmatmul.mubr.bf16.vlgmr.msra.gmra.mrb[16].mxu1 %v1847_v43  ;;  %v3612_v48 = vpop.eup %3611 }
 0x2e7   : > { %v1303_v31 = vpop.permute.xlu0 %1302  ;;  %1487 = vadd.xlane.f32.xlu0 %v3604_v21  ;;  %v1273_v6 = vpop.permute.xlu1 %1272 }
 0x2e8   : > { %v1346_v23 = vsub.f32 %v5213_v24, %v1273_v6  ;;  %1485 = vadd.xlane.f32.xlu1 %v3600_v9  ;;  %3619 = vpow2.f32 %v1367_v61  ;;  %v5216_v9 = vld [vmem:[#allocation53_spill] sm:$0xff] }
 0x2e9   : > { %3621 = vpow2.f32 %v1397_v17  ;;  %v5218_v17 = vld [vmem:[#allocation56_spill] sm:$0xff] }
 0x2ea   : > { %v1399_v30 = vmul.f32 1.442695, %v1346_v23  ;;  %3623 = vpow2.f32 %v1403_v46  ;;  %v3614_v59 = vpop.eup %3613  ;;  %v5219_v46 = vld [vmem:[#allocation55_spill] sm:$0xff] }
 0x2eb   : > { %v1213_v42 = vpop.permute.xlu0 %1212  ;;  %1497 = vadd.xlane.f32.xlu0 %v3612_v48  ;;  %v1218_v62 = vpop.permute.xlu1 %1217 }
 0x2ec   : > { %v1335_v20 = vsub.f32 %v5214_v7, %v1218_v62  ;;  %1491 = vadd.xlane.f32.xlu1 %v3602_v18  ;;  %3625 = vpow2.f32 %v1399_v30  ;;  %v1334_v45 = vsub.f32 %v5215_v26, %v1213_v42  ;;  %v3616_v38 = vpop.eup %3615  ;;  %v1379_v62 = vmul.f32 1.442695, %v1336_v28  ;;  %v5220_v7 = vld [vmem:[#allocation52_spill] sm:$0xff] }
 0x2ee   : > { %v1377_v21 = vmul.f32 1.442695, %v1335_v20  ;;  %v3618_v43 = vpop.eup %3617  ;;  %v1375_v61 = vmul.f32 1.442695, %v1334_v45  ;;  %v1352_v20 = vsub.f32 %v5220_v7, %v1303_v31  ;;  %v5221_v45 = vld [vmem:[#allocation57_spill] sm:$0xff]  ;;  %v5226_v7 = vld [vmem:[#allocation63_spill] sm:$0xff] }
 0x2ef   : > { %v1293_v15 = vpop.permute.xlu0 %1292  ;;  %1529 = vadd.xlane.f32.xlu0 %v3614_v59  ;;  %v1298_v51 = vpop.permute.xlu1 %1297 }
 0x2f0   : > { %v1351_v4 = vsub.f32 %v5216_v9, %v1298_v51  ;;  %1523 = vadd.xlane.f32.xlu1 %v3606_v22  ;;  %3627 = vpow2.f32 %v1377_v21  ;;  %v1350_v6 = vsub.f32 %v5218_v17, %v1293_v15  ;;  %v1841_v22 = vpack.c.bf16 %v3616_v38, %v3612_v48 }
 0x2f1   : > { %v1411_v48 = vmul.f32 1.442695, %v1352_v20 }
 0x2f2   : > { %v1409_v14 = vmul.f32 1.442695, %v1351_v4  ;;  %v3620_v29 = vpop.eup %3619  ;;  %v1407_v15 = vmul.f32 1.442695, %v1350_v6 }
 0x2f3   : > { %v1243_v11 = vpop.permute.xlu0 %1242  ;;  %1493 = vadd.xlane.f32.xlu0 %v3618_v43  ;;  %v1208_v18 = vpop.permute.xlu1 %1207  ;;  %v1840_v23 = vpack.c.bf16 %v3620_v29, %v3618_v43 }
 0x2f4   : > { %v1333_v24 = vsub.f32 %v5219_v46, %v1208_v18  ;;  %1519 = vadd.xlane.f32.xlu1 %v3610_v63  ;;  %v3622_v30 = vpop.eup %3621  ;;  %3629 = vpow2.f32 %v1409_v14  ;;  %v5222_v14 = vld [vmem:[#allocation62_spill] sm:$0xff] }
 0x2f5   : > { %v3624_v42 = vpop.eup %3623  ;;  %3284 = vmatprep.mubr.bf16.mxu0 %v1840_v23  ;;  %3631 = vpow2.f32 %v1375_v61  ;;  %v5223_v61 = vld [vmem:[#allocation59_spill] sm:$0xff] }
 0x2f6   : > { %v1373_v58 = vmul.f32 1.442695, %v1333_v24  ;;  %v3626_v21 = vpop.eup %3625  ;;  %3285 = vmatmul.mubr.bf16.gmra.mrb[20].mxu0 %v1841_v22  ;;  %v1849_v4 = vpack.c.bf16 %v3624_v42, %v3614_v59  ;;  %v5225_v24 = vld [vmem:[#allocation64_spill] sm:$0xff] }
 0x2f7   : > { %v1233_v51 = vpop.permute.xlu0 %1232  ;;  %1525 = vadd.xlane.f32.xlu0 %v3622_v30  ;;  %v1288_v26 = vpop.permute.xlu1 %1287  ;;  %v1848_v63 = vpack.c.bf16 %v3626_v21, %v3622_v30 }
 0x2f8   : > { %v1349_v9 = vsub.f32 %v5221_v45, %v1288_v26  ;;  %1499 = vadd.xlane.f32.xlu1 %v3616_v38  ;;  %3633 = vpow2.f32 %v1373_v58  ;;  %v1338_v18 = vsub.f32 %v5222_v14, %v1233_v51  ;;  %v5224_v38 = vld [vmem:[#allocation58_spill] sm:$0xff]  ;;  %v5227_v45 = vld [vmem:[#allocation60_spill] sm:$0xff] }
 0x2f9   : > { %3635 = vpow2.f32 %v1379_v62  ;;  %3316 = vmatprep.mubr.bf16.mxu1 %v1848_v63  ;;  %v1340_v6 = vsub.f32 %v5224_v38, %v1243_v11  ;;  %v5229_v38 = vld [vmem:[#allocation61_spill] sm:$0xff] }
 0x2fa   : > { %v1405_v43 = vmul.f32 1.442695, %v1349_v9  ;;  %v3628_v31 = vpop.eup %3627  ;;  %3317 = vmatmul.mubr.bf16.gmra.mrb[20].mxu1 %v1849_v4  ;;  %3637 = vpow2.f32 %v1407_v15  ;;  %v1383_v22 = vmul.f32 1.442695, %v1338_v18  ;;  %v5228_v4 = vld [vmem:[#allocation65_spill] sm:$0xff] }
 0x2fb   : > { %v1313_v49 = vpop.permute.xlu0 %1312  ;;  %v1238_v28 = vpop.permute.xlu1 %1237  ;;  %1505 = vadd.xlane.f32.xlu0 %v3628_v31  ;;  %v1387_v51 = vmul.f32 1.442695, %v1340_v6 }
 0x2fc   : > { %v1339_v17 = vsub.f32 %v5223_v61, %v1238_v28  ;;  %1531 = vadd.xlane.f32.xlu1 %v3624_v42  ;;  %3639 = vpow2.f32 %v1405_v43  ;;  %v1354_v23 = vsub.f32 %v5225_v24, %v1313_v49 }
 0x2fd   : > { %3641 = vpow2.f32 %v1411_v48 }
 0x2fe   : > { %v1385_v59 = vmul.f32 1.442695, %v1339_v17  ;;  %v3630_v46 = vpop.eup %3629  ;;  %v1415_v15 = vmul.f32 1.442695, %v1354_v23 }
 0x2ff   : > { %v1228_v30 = vpop.permute.xlu1 %1227  ;;  %v1323_v62 = vpop.permute.xlu0 %1322  ;;  %1537 = vadd.xlane.f32.xlu0 %v3630_v46 }
 0x300   : > { %v1337_v20 = vsub.f32 %v5226_v7, %v1228_v30  ;;  %1495 = vadd.xlane.f32.xlu1 %v3620_v29  ;;  %3643 = vpow2.f32 %v1385_v59  ;;  %v3632_v58 = vpop.eup %3631  ;;  %v1356_v9 = vsub.f32 %v5227_v45, %v1323_v62 }
 0x301   : > { %3645 = vpow2.f32 %v1383_v22 }
 0x302   : > { %v1381_v26 = vmul.f32 1.442695, %v1337_v20  ;;  %v3634_v42 = vpop.eup %3633  ;;  %v1419_v18 = vmul.f32 1.442695, %v1356_v9 }
 0x303   : > { %v1308_v11 = vpop.permute.xlu1 %1307  ;;  %v3636_v63 = vpop.eup %3635  ;;  %1501 = vadd.xlane.f32.xlu0 %v3634_v42  ;;  %v1842_v43 = vpack.c.bf16 %v3632_v58, %v3634_v42 }
 0x304   : > { %v1353_v48 = vsub.f32 %v5228_v4, %v1308_v11  ;;  %1527 = vadd.xlane.f32.xlu1 %v3626_v21  ;;  %3647 = vpow2.f32 %v1381_v26  ;;  %v1843_v49 = vpack.c.bf16 %v3636_v63, %v3628_v31  ;;  %v3638_v28 = vpop.eup %3637  ;;  %v4847_v62 = vpop.permute.xlu0 %1648 }
 0x305   : > { %3649 = vpow2.f32 %v1387_v51  ;;  %3288 = vmatprep.mubr.bf16.mxu0 %v1842_v43 }
 0x306   : > { %v1413_v29 = vmul.f32 1.442695, %v1353_v48  ;;  %v3640_v14 = vpop.eup %3639  ;;  %3651 = vpow2.f32 %v1415_v15  ;;  %3289 = vmatmul.mubr.bf16.gmra.mrb[24].mxu0 %v1843_v49  ;;  %v5230_v48 = vld [vmem:[#allocation67_spill] sm:$0xff] }
 0x307   : > { %v1318_v61 = vpop.permute.xlu1 %1317  ;;  %v3642_v17 = vpop.eup %3641  ;;  %1533 = vadd.xlane.f32.xlu0 %v3640_v14  ;;  %v1850_v59 = vpack.c.bf16 %v3638_v28, %v3640_v14  ;;  %v5231_v43 = vsub.f32 %v5230_v48, %v4601_v57 }
 0x308   : > { %3653 = vpow2.f32 %v1413_v29  ;;  %v1355_v6 = vsub.f32 %v5229_v38, %v1318_v61  ;;  %1507 = vadd.xlane.f32.xlu1 %v3636_v63  ;;  %v1851_v21 = vpack.c.bf16 %v3642_v17, %v3630_v46  ;;  %v4849_v45 = vpop.permute.xlu0 %1663 }
 0x309   : > { %3320 = vmatprep.mubr.bf16.mxu1 %v1850_v59  ;;  %3655 = vpow2.f32 %v1419_v18  ;;  %v1163_v49 = vmul.f32 1.442695, %v5231_v43  ;;  %v1423_v43 = vld [vmem:[#allocation3 + $0x10] sm:$0xff] }
 0x30a   : > { %v1417_v24 = vmul.f32 1.442695, %v1355_v6  ;;  %v3644_v31 = vpop.eup %3643  ;;  %3321 = vmatmul.mubr.bf16.gmra.mrb[24].mxu1 %v1851_v21 }
 0x30b   : > { %1513 = vadd.xlane.f32.xlu0 %v3644_v31  ;;  %v3646_v23 = vpop.eup %3645 }
 0x30c   : > { %3657 = vpow2.f32 %v1417_v24  ;;  %1539 = vadd.xlane.f32.xlu1 %v3642_v17  ;;  %v4851_v11 = vpop.permute.xlu0 %1673 }
 0x30d   : > { %3659 = vpow2.f32 %v1163_v49 }
 0x30e   : > { %v3648_v30 = vpop.eup %3647 }
 0x30f   : > { %v3650_v22 = vpop.eup %3649  ;;  %v1844_v7 = vpack.c.bf16 %v3646_v23, %v3648_v30 }
 0x310   : > { %1503 = vadd.xlane.f32.xlu1 %v3632_v58  ;;  %v3652_v20 = vpop.eup %3651  ;;  %v1845_v51 = vpack.c.bf16 %v3650_v22, %v3644_v31  ;;  %v4853_v58 = vpop.permute.xlu1 %1653 }
 0x311   : > { %3292 = vmatprep.mubr.bf16.mxu0 %v1844_v7  ;;  %v4855_v63 = vpop.permute.xlu0 %1683 }
 0x312   : > { %v3654_v26 = vpop.eup %3653  ;;  %3293 = vmatmul.mubr.bf16.gmra.mrb[28].mxu0 %v1845_v51 }
 0x313   : > { %v1852_v46 = vpack.c.bf16 %v3652_v20, %v3654_v26  ;;  %v3656_v42 = vpop.eup %3655 }
 0x314   : > { %1535 = vadd.xlane.f32.xlu1 %v3638_v28  ;;  %v4857_v4 = vpop.permute.xlu1 %1658  ;;  %v5232_v28 = vld [vmem:[#allocation68_spill] sm:$0xff] }
 0x315   : > { %3324 = vmatprep.mubr.bf16.mxu1 %v1852_v46  ;;  %v5233_v29 = vsub.f32 %v5232_v28, %v4604_v50  ;;  %v4865_v18 = vpop.permute.xlu0 %1733  ;;  %v1455_v28 = vmul.f32 %v4693_v0, %v1423_v43  ;;  %v1421_v43 = vld [vmem:[#allocation3] sm:$0xff] }
 0x316   : > { %v3658_v15 = vpop.eup %3657 }
 0x317   : > { %1545 = vadd.xlane.f32.xlu0 %v3658_v15  ;;  %v1853_v9 = vpack.c.bf16 %v3656_v42, %v3658_v15  ;;  %v1161_v14 = vmul.f32 1.442695, %v5233_v29  ;;  %v4873_v6 = vpop.eup %3659 }
 0x318   : > { %1515 = vadd.xlane.f32.xlu1 %v3650_v22  ;;  %v4867_v61 = vpop.permute.xlu1 %1668 }
 0x319   : > { %3325 = vmatmul.mubr.bf16.gmra.mrb[28].mxu1 %v1853_v9  ;;  %3661 = vpow2.f32 %v1161_v14  ;;  %v4869_v17 = vpop.permute.xlu0 %1743  ;;  %v1439_v14 = vld [vmem:[#allocation3 + $0x90] sm:$0xff] }
 0x31b   : > { %1509 = vadd.xlane.f32.xlu0 %v3648_v30 }
 0x31c   : > { %1547 = vadd.xlane.f32.xlu1 %v3656_v42  ;;  %v4871_v38 = vpop.permute.xlu1 %1678 }
 0x31d   : > { %v4877_v57 = vpop.permute.xlu0 %1753 }
 0x31f   : > { %1541 = vadd.xlane.f32.xlu0 %v3654_v26 }
 0x320   : > { %1511 = vadd.xlane.f32.xlu1 %v3646_v23  ;;  %v4879_v21 = vpop.permute.xlu1 %1728 }
 0x321   : > { %v4883_v50 = vpop.permute.xlu0 %1763 }
 0x323   : > { %v4875_v59 = vpop.eup %3661 }
 0x324   : > { %1543 = vadd.xlane.f32.xlu1 %v3652_v20  ;;  %v4885_v24 = vpop.permute.xlu1 %1738 }
 0x325   : > { %v4887_v31 = vpop.permute.xlu0 %1703 }
 0x326   : > { %5234 = vst [vmem:[#allocation66_spill] sm:$0xff] %v4887_v31 }
 0x328   : > { %v4889_v23 = vpop.permute.xlu1 %1748 }
 0x329   : > { %v4891_v30 = vpop.permute.xlu0 %1783 }
 0x32a   : > { %5235 = vst [vmem:[#allocation69_spill] sm:$0xff] %v4891_v30 }
 0x32c   : > { %v4893_v22 = vpop.permute.xlu1 %1758 }
 0x32d   : > { %v4895_v7 = vpop.permute.xlu0 %1693 }
 0x32e   : > { %5236 = vst [vmem:[#allocation34_spill] sm:$0xff] %v4895_v7 }
 0x330   : > { %v4897_v20 = vpop.permute.xlu1 %1698 }
 0x331   : > { %v4899_v51 = vpop.permute.xlu0 %1773 }
 0x332   : > { %5237 = vst [vmem:[#allocation35_spill] sm:$0xff] %v4899_v51 }
 0x334   : > { %v4901_v26 = vpop.permute.xlu1 %1778 }
 0x335   : > { %1798 = vperm.xlu1 %3485, %v4875_v59   ;;  %1803 = vperm.xlu0 %3486, %v4873_v6   ;;  %5238 = vst [vmem:[#allocation37_spill] sm:$0xff] %v4901_v26  ;;  %v4903_v46 = vpop.permute.xlu0 %1723 }
 0x336   : > { %5239 = vst [vmem:[#allocation36_spill] sm:$0xff] %v4903_v46  ;;  %v1471_v46 = vmul.f32 %v4739_v34, %v1439_v14  ;;  %v1453_v34 = vmul.f32 %v4669_v5, %v1421_v43 }
 0x338   : > { %v4905_v42 = vpop.permute.xlu1 %1688 }
 0x339   : > { %v4907_v15 = vpop.permute.xlu0 %1713 }
 0x33a   : > { %5240 = vst [vmem:[#allocation38_spill] sm:$0xff] %v4907_v15  ;;  %v1437_v15 = vld [vmem:[#allocation3 + $0x80] sm:$0xff] }
 0x33c   : > { %v4909_v9 = vpop.permute.xlu1 %1768 }
 0x33d   : > { %5241 = vst [vmem:[#allocation39_spill] sm:$0xff] %v4909_v9  ;;  %v4911_v48 = vpop.permute.xlu0 %1793 }
 0x33e   : > { %5242 = vst [vmem:[#allocation41_spill] sm:$0xff] %v4911_v48  ;;  %v1469_v48 = vmul.f32 %v4728_v54, %v1437_v15 }
 0x340   : > { %v4913_v49 = vpop.permute.xlu1 %1718 }
 0x341   : > { %5243 = vst [vmem:[#allocation40_spill] sm:$0xff] %v4913_v49  ;;  %v1422_v49 = vld [vmem:[#allocation3 + $0x8] sm:$0xff] }
 0x344   : > { %v4916_v30 = vpop.permute.xlu1 %1708 }
 0x348   : > { %v4922_v31 = vpop.permute.xlu1 %1788 }
 0x349   : > { %5244 = vst [vmem:[#allocation43_spill] sm:$0xff] %v4922_v31 }
 0x368   : > { %v1490_v29 = vpop.xlane.xlu0 %1489 }
 0x369   : > { %v1551_v51 = vadd.f32 %v1490_v29, %v1455_v28  ;;  %v1454_v28 = vmul.f32 %v4684_v56, %v1422_v49  ;;  %v1427_v29 = vld [vmem:[#allocation3 + $0x30] sm:$0xff]  ;;  %v1440_v49 = vld [vmem:[#allocation3 + $0x98] sm:$0xff] }
 0x36a   : > { %v1459_v54 = vmul.f32 %v4719_v12, %v1427_v29  ;;  %v1425_v12 = vld [vmem:[#allocation3 + $0x20] sm:$0xff]  ;;  %v1438_v29 = vld [vmem:[#allocation3 + $0x88] sm:$0xff] }
 0x36b   : > { %1584 = vst.msk [vmem:[#allocation3 + $0x10] sm:$0xff] %vm1581_vm1, %v1551_v51 }
 0x36c   : > { %v1522_v26 = vpop.xlane.xlu0 %1521 }
 0x36d   : > { %v1567_v7 = vadd.f32 %v1522_v26, %v1471_v46  ;;  %v1424_v46 = vld [vmem:[#allocation3 + $0x18] sm:$0xff] }
 0x36f   : > { %1600 = vst.msk [vmem:[#allocation3 + $0x90] sm:$0xff] %vm1581_vm1, %v1567_v7 }
 0x370   : > { %v1518_v9 = vpop.xlane.xlu0 %1517 }
 0x371   : > { %v1565_v0 = vadd.f32 %v1518_v9, %v1469_v48  ;;  %v1456_v9 = vmul.f32 %v4675_v3, %v1424_v46  ;;  %v1443_v48 = vld [vmem:[#allocation3 + $0xb0] sm:$0xff]  ;;  %v1457_v3 = vmul.f32 %v4711_v37, %v1425_v12  ;;  %v1470_v46 = vmul.f32 %v4709_v16, %v1438_v29 }
 0x372   : > { %v1475_v5 = vmul.f32 %v4761_v13, %v1443_v48  ;;  %v1441_v13 = vld [vmem:[#allocation3 + $0xa0] sm:$0xff]  ;;  %v1447_v12 = vld [vmem:[#allocation3 + $0xd0] sm:$0xff] }
 0x373   : > { %1598 = vst.msk [vmem:[#allocation3 + $0x80] sm:$0xff] %vm1581_vm1, %v1565_v0 }
 0x374   : > { %v1488_v51 = vpop.xlane.xlu0 %1487 }
 0x375   : > { %v1550_v14 = vadd.f32 %v1488_v51, %v1454_v28  ;;  %v1486_v26 = vpop.xlane.xlu1 %1485  ;;  %v1472_v28 = vmul.f32 %v4717_v10, %v1440_v49  ;;  %v1473_v10 = vmul.f32 %v4750_v36, %v1441_v13  ;;  %v1444_v49 = vld [vmem:[#allocation3 + $0xb8] sm:$0xff] }
 0x376   : > { %v1549_v7 = vadd.f32 %v1486_v26, %v1453_v34 }
 0x377   : > { %1583 = vst.msk [vmem:[#allocation3 + $0x8] sm:$0xff] %vm1581_vm1, %v1550_v14 }
 0x378   : > { %1582 = vst.msk [vmem:[#allocation3] sm:$0xff] %vm1581_vm1, %v1549_v7  ;;  %v1498_v15 = vpop.xlane.xlu0 %1497 }
 0x379   : > { %v1555_v0 = vadd.f32 %v1498_v15, %v1459_v54  ;;  %v1492_v56 = vpop.xlane.xlu1 %1491  ;;  %v1428_v54 = vld [vmem:[#allocation3 + $0x38] sm:$0xff] }
 0x37a   : > { %v1552_v31 = vadd.f32 %v1492_v56, %v1456_v9  ;;  %v1460_v48 = vmul.f32 %v4695_v53, %v1428_v54  ;;  %v1431_v56 = vld [vmem:[#allocation3 + $0x50] sm:$0xff]  ;;  %v1479_v53 = vmul.f32 %v4783_v55, %v1447_v12  ;;  %v1432_v55 = vld [vmem:[#allocation3 + $0x58] sm:$0xff]  ;;  %v1430_v12 = vld [vmem:[#allocation3 + $0x48] sm:$0xff] }
 0x37b   : > { %1588 = vst.msk [vmem:[#allocation3 + $0x30] sm:$0xff] %vm1581_vm1, %v1555_v0  ;;  %v1463_v16 = vmul.f32 %v4772_v52, %v1431_v56  ;;  %v1442_v52 = vld [vmem:[#allocation3 + $0xa8] sm:$0xff] }
 0x37c   : > { %1585 = vst.msk [vmem:[#allocation3 + $0x18] sm:$0xff] %vm1581_vm1, %v1552_v31  ;;  %v1530_v43 = vpop.xlane.xlu0 %1529 }
 0x37d   : > { %v1571_v51 = vadd.f32 %v1530_v43, %v1475_v5  ;;  %v1524_v34 = vpop.xlane.xlu1 %1523  ;;  %v1476_v43 = vmul.f32 %v4741_v32, %v1444_v49  ;;  %v1435_v49 = vld [vmem:[#allocation3 + $0x70] sm:$0xff] }
 0x37e   : > { %v1568_v14 = vadd.f32 %v1524_v34, %v1472_v28 }
 0x37f   : > { %1604 = vst.msk [vmem:[#allocation3 + $0xb0] sm:$0xff] %vm1581_vm1, %v1571_v51  ;;  %v1426_v51 = vld [vmem:[#allocation3 + $0x28] sm:$0xff] }
 0x380   : > { %1601 = vst.msk [vmem:[#allocation3 + $0x98] sm:$0xff] %vm1581_vm1, %v1568_v14  ;;  %v1494_v26 = vpop.xlane.xlu0 %1493  ;;  %v1458_v14 = vmul.f32 %v4686_v39, %v1426_v51 }
 0x381   : > { %v1553_v7 = vadd.f32 %v1494_v26, %v1457_v3  ;;  %v1520_v31 = vpop.xlane.xlu1 %1519 }
 0x382   : > { %v1566_v15 = vadd.f32 %v1520_v31, %v1470_v46  ;;  %v1429_v46 = vld [vmem:[#allocation3 + $0x40] sm:$0xff]  ;;  %v1474_v31 = vmul.f32 %v4730_v25, %v1442_v52 }
 0x383   : > { %1586 = vst.msk [vmem:[#allocation3 + $0x20] sm:$0xff] %vm1581_vm1, %v1553_v7  ;;  %v1461_v7 = vmul.f32 %v4791_v33, %v1429_v46  ;;  %v1448_v33 = vld [vmem:[#allocation3 + $0xd8] sm:$0xff] }
 0x384   : > { %1599 = vst.msk [vmem:[#allocation3 + $0x88] sm:$0xff] %vm1581_vm1, %v1566_v15  ;;  %v1526_v9 = vpop.xlane.xlu0 %1525 }
 0x385   : > { %v1569_v37 = vadd.f32 %v1526_v9, %v1473_v10  ;;  %v1500_v0 = vpop.xlane.xlu1 %1499  ;;  %v1445_v10 = vld [vmem:[#allocation3 + $0xc0] sm:$0xff] }
 0x386   : > { %v1556_v5 = vadd.f32 %v1500_v0, %v1460_v48  ;;  %v1477_v48 = vmul.f32 %v4797_v60, %v1445_v10 }
 0x387   : > { %1602 = vst.msk [vmem:[#allocation3 + $0xa0] sm:$0xff] %vm1581_vm1, %v1569_v37  ;;  %v1464_v37 = vmul.f32 %v4752_v1, %v1432_v55  ;;  %v1462_v1 = vmul.f32 %v4774_v47, %v1430_v12  ;;  %v1632_v12 = vld [vmem:[#allocation4 + $0x90] sm:$0xff] }
 0x388   : > { %1589 = vst.msk [vmem:[#allocation3 + $0x38] sm:$0xff] %vm1581_vm1, %v1556_v5  ;;  %v1506_v28 = vpop.xlane.xlu0 %1505 }
 0x389   : > { %v1532_v36 = vpop.xlane.xlu1 %1531  ;;  %v1559_v34 = vadd.f32 %v1506_v28, %v1463_v16  ;;  %v1467_v16 = vmul.f32 %v4803_v41, %v1435_v49  ;;  %v1450_v49 = vld [vmem:[#allocation3 + $0xe8] sm:$0xff] }
 0x38a   : > { %v1572_v29 = vadd.f32 %v1532_v36, %v1476_v43  ;;  %v1480_v43 = vmul.f32 %v4763_v8, %v1448_v33 }
 0x38b   : > { %1592 = vst.msk [vmem:[#allocation3 + $0x50] sm:$0xff] %vm1581_vm1, %v1559_v34 }
 0x38c   : > { %1605 = vst.msk [vmem:[#allocation3 + $0xb8] sm:$0xff] %vm1581_vm1, %v1572_v29  ;;  %v1538_v3 = vpop.xlane.xlu0 %1537  ;;  %v1446_v29 = vld [vmem:[#allocation3 + $0xc8] sm:$0xff] }
 0x38d   : > { %v1496_v26 = vpop.xlane.xlu1 %1495  ;;  %v1575_v13 = vadd.f32 %v1538_v3, %v1479_v53  ;;  %v1478_v41 = vmul.f32 %v4785_v35, %v1446_v29  ;;  %v1436_v3 = vld [vmem:[#allocation3 + $0x78] sm:$0xff] }
 0x38e   : > { %v1554_v32 = vadd.f32 %v1496_v26, %v1458_v14  ;;  %v1451_v14 = vld [vmem:[#allocation3 + $0xf0] sm:$0xff] }
 0x38f   : > { %1608 = vst.msk [vmem:[#allocation3 + $0xd0] sm:$0xff] %vm1581_vm1, %v1575_v13  ;;  %v1483_v46 = vmul.f32 %v4875_v59, %v1451_v14  ;;  %v1468_v13 = vmul.f32 %v4793_v40, %v1436_v3  ;;  %v1449_v59 = vld [vmem:[#allocation3 + $0xe0] sm:$0xff]  ;;  %v1824_v3 = vmul.f32 %v4885_v24, %v1632_v12 }
 0x390   : > { %1587 = vst.msk [vmem:[#allocation3 + $0x28] sm:$0xff] %vm1581_vm1, %v1554_v32  ;;  %v1502_v54 = vpop.xlane.xlu0 %1501  ;;  %v1433_v32 = vld [vmem:[#allocation3 + $0x60] sm:$0xff]  ;;  %v1481_v40 = vmul.f32 %v4812_v27, %v1449_v59  ;;  %v1617_v27 = vld [vmem:[#allocation4 + $0x18] sm:$0xff] }
 0x391   : > { %v1528_v15 = vpop.xlane.xlu1 %1527  ;;  %v1557_v9 = vadd.f32 %v1502_v54, %v1461_v7  ;;  %v1465_v35 = vmul.f32 %v4809_v19, %v1433_v32  ;;  %v1622_v12 = vld [vmem:[#allocation4 + $0x40] sm:$0xff] }
 0x392   : > { %v1570_v39 = vadd.f32 %v1528_v15, %v1474_v31  ;;  %v1452_v31 = vld [vmem:[#allocation3 + $0xf8] sm:$0xff] }
 0x393   : > { %1590 = vst.msk [vmem:[#allocation3 + $0x40] sm:$0xff] %vm1581_vm1, %v1557_v9  ;;  %v1484_v10 = vmul.f32 %v4873_v6, %v1452_v31  ;;  %v1482_v6 = vmul.f32 %v4805_v44, %v1450_v49  ;;  %v1635_v49 = vld [vmem:[#allocation4 + $0xa8] sm:$0xff] }
 0x394   : > { %1603 = vst.msk [vmem:[#allocation3 + $0xa8] sm:$0xff] %vm1581_vm1, %v1570_v39  ;;  %v1534_v0 = vpop.xlane.xlu0 %1533  ;;  %v1434_v39 = vld [vmem:[#allocation3 + $0x68] sm:$0xff] }
 0x395   : > { %v1508_v56 = vpop.xlane.xlu1 %1507  ;;  %v1573_v5 = vadd.f32 %v1534_v0, %v1477_v48  ;;  %v1466_v0 = vmul.f32 %v4799_v2, %v1434_v39  ;;  %v1634_v39 = vld [vmem:[#allocation4 + $0xa0] sm:$0xff] }
 0x396   : > { %v1560_v25 = vadd.f32 %v1508_v56, %v1464_v37 }
 0x397   : > { %1606 = vst.msk [vmem:[#allocation3 + $0xc0] sm:$0xff] %vm1581_vm1, %v1573_v5  ;;  %v1616_v5 = vld [vmem:[#allocation4 + $0x10] sm:$0xff] }
 0x398   : > { %1593 = vst.msk [vmem:[#allocation3 + $0x58] sm:$0xff] %vm1581_vm1, %v1560_v25  ;;  %v1514_v28 = vpop.xlane.xlu0 %1513 }
 0x399   : > { %v1540_v36 = vpop.xlane.xlu1 %1539  ;;  %v1563_v60 = vadd.f32 %v1514_v28, %v1467_v16  ;;  %v1614_v16 = vld [vmem:[#allocation4] sm:$0xff]  ;;  %v1615_v28 = vld [vmem:[#allocation4 + $0x8] sm:$0xff] }
 0x39a   : > { %v1576_v51 = vadd.f32 %v1540_v36, %v1480_v43  ;;  %v1808_v36 = vmul.f32 %v4857_v4, %v1616_v5  ;;  %v1806_v2 = vmul.f32 %v4847_v62, %v1614_v16  ;;  %v1807_v44 = vmul.f32 %v4853_v58, %v1615_v28 }
 0x39b   : > { %1596 = vst.msk [vmem:[#allocation3 + $0x70] sm:$0xff] %vm1581_vm1, %v1563_v60 }
 0x39c   : > { %1609 = vst.msk [vmem:[#allocation3 + $0xd8] sm:$0xff] %vm1581_vm1, %v1576_v51  ;;  %v1809_v51 = vmul.f32 %v4849_v45, %v1617_v27 }
 0x39d   : > { %v1504_v34 = vpop.xlane.xlu1 %1503 }
 0x39e   : > { %v1558_v53 = vadd.f32 %v1504_v34, %v1462_v1  ;;  %v1630_v1 = vld [vmem:[#allocation4 + $0x80] sm:$0xff] }
 0x39f   : > { %v1822_v62 = vmul.f32 %v4879_v21, %v1630_v1  ;;  %v1620_v21 = vld [vmem:[#allocation4 + $0x30] sm:$0xff] }
 0x3a0   : > { %1591 = vst.msk [vmem:[#allocation3 + $0x48] sm:$0xff] %vm1581_vm1, %v1558_v53  ;;  %v1633_v53 = vld [vmem:[#allocation4 + $0x98] sm:$0xff]  ;;  %v1640_v1 = vld [vmem:[#allocation4 + $0xd0] sm:$0xff] }
 0x3a1   : > { %v1536_v8 = vpop.xlane.xlu1 %1535  ;;  %v1825_v45 = vmul.f32 %v4869_v17, %v1633_v53  ;;  %v1812_v17 = vmul.f32 %v4871_v38, %v1620_v21  ;;  %v1638_v53 = vld [vmem:[#allocation4 + $0xc0] sm:$0xff]  ;;  %v5250_v21 = vld [vmem:[#allocation35_spill] sm:$0xff] }
 0x3a2   : > { %v1574_v26 = vadd.f32 %v1536_v8, %v1478_v41  ;;  %v1631_v8 = vld [vmem:[#allocation4 + $0x88] sm:$0xff] }
 0x3a3   : > { %v1823_v58 = vmul.f32 %v4865_v18, %v1631_v8  ;;  %v1641_v8 = vld [vmem:[#allocation4 + $0xd8] sm:$0xff] }
 0x3a4   : > { %1607 = vst.msk [vmem:[#allocation3 + $0xc8] sm:$0xff] %vm1581_vm1, %v1574_v26  ;;  %v1546_v52 = vpop.xlane.xlu0 %1545 }
 0x3a5   : > { %v1579_v47 = vadd.f32 %v1546_v52, %v1483_v46  ;;  %v1516_v7 = vpop.xlane.xlu1 %1515 }
 0x3a6   : > { %v1564_v54 = vadd.f32 %v1516_v7, %v1468_v13 }
 0x3a7   : > { %1612 = vst.msk [vmem:[#allocation3 + $0xf0] sm:$0xff] %vm1581_vm1, %v1579_v47 }
 0x3a8   : > { %1597 = vst.msk [vmem:[#allocation3 + $0x78] sm:$0xff] %vm1581_vm1, %v1564_v54  ;;  %v1510_v15 = vpop.xlane.xlu0 %1509 }
 0x3a9   : > { %v1561_v55 = vadd.f32 %v1510_v15, %v1465_v35  ;;  %v1548_v9 = vpop.xlane.xlu1 %1547  ;;  %v1618_v35 = vld [vmem:[#allocation4 + $0x20] sm:$0xff]  ;;  %v1621_v15 = vld [vmem:[#allocation4 + $0x38] sm:$0xff] }
 0x3aa   : > { %v1580_v48 = vadd.f32 %v1548_v9, %v1484_v10  ;;  %v1619_v10 = vld [vmem:[#allocation4 + $0x28] sm:$0xff]  ;;  %v1810_v59 = vmul.f32 %v4867_v61, %v1618_v35  ;;  %v1813_v9 = vmul.f32 %v4855_v63, %v1621_v15  ;;  %v1826_v61 = vmul.f32 %v4889_v23, %v1634_v39  ;;  %v1624_v23 = vld [vmem:[#allocation4 + $0x50] sm:$0xff]  ;;  %v1629_v39 = vld [vmem:[#allocation4 + $0x78] sm:$0xff] }
 0x3ab   : > { %1594 = vst.msk [vmem:[#allocation3 + $0x60] sm:$0xff] %vm1581_vm1, %v1561_v55  ;;  %v1636_v55 = vld [vmem:[#allocation4 + $0xb0] sm:$0xff] }
 0x3ac   : > { %1613 = vst.msk [vmem:[#allocation3 + $0xf8] sm:$0xff] %vm1581_vm1, %v1580_v48  ;;  %v1542_v37 = vpop.xlane.xlu0 %1541 }
 0x3ad   : > { %v1577_v19 = vadd.f32 %v1542_v37, %v1481_v40  ;;  %v1512_v56 = vpop.xlane.xlu1 %1511  ;;  %v1811_v37 = vmul.f32 %v4851_v11, %v1619_v10  ;;  %v1827_v11 = vmul.f32 %v4877_v57, %v1635_v49 }
 0x3ae   : > { %v1562_v33 = vadd.f32 %v1512_v56, %v1466_v0  ;;  %v1637_v0 = vld [vmem:[#allocation4 + $0xb8] sm:$0xff] }
 0x3af   : > { %1610 = vst.msk [vmem:[#allocation3 + $0xe0] sm:$0xff] %vm1581_vm1, %v1577_v19  ;;  %v1829_v63 = vmul.f32 %v4883_v50, %v1637_v0  ;;  %v1816_v50 = vmul.f32 %v4897_v20, %v1624_v23  ;;  %v5254_v23 = vld [vmem:[#allocation43_spill] sm:$0xff] }
 0x3b0   : > { %1595 = vst.msk [vmem:[#allocation3 + $0x68] sm:$0xff] %vm1581_vm1, %v1562_v33  ;;  %v1828_v33 = vmul.f32 %v4893_v22, %v1636_v55  ;;  %v1628_v55 = vld [vmem:[#allocation4 + $0x70] sm:$0xff] }
 0x3b1   : > { %v1544_v25 = vpop.xlane.xlu1 %1543 }
 0x3b2   : > { %v1578_v43 = vadd.f32 %v1544_v25, %v1482_v6 }
 0x3b4   : > { %1611 = vst.msk [vmem:[#allocation3 + $0xe8] sm:$0xff] %vm1581_vm1, %v1578_v43 }
 0x3b5   : > { %v3282_v60 = vpop.f32.mrb[16].mxu0 }
 0x3b6   : > { %v2178_v34 = vadd.f32 %v3282_v60, %v1808_v36  ;;  %v1968_v29 = vpop.f32.mrb[17].mxu0  ;;  %v1625_v60 = vld [vmem:[#allocation4 + $0x58] sm:$0xff] }
 0x3b7   : > { %v2176_v41 = vadd.f32 %v1968_v29, %v1806_v2  ;;  %v3283_v14 = vpop.f32.mrb[18].mxu0  ;;  %v5245_v29 = vld [vmem:[#allocation66_spill] sm:$0xff] }
 0x3b8   : > { %2210 = vst [vmem:[#allocation4 + $0x10] sm:$0xff] %v2178_v34  ;;  %v2179_v4 = vadd.f32 %v3283_v14, %v1809_v51  ;;  %v1971_v26 = vpop.f32.mrb[19].mxu0  ;;  %v1623_v51 = vld [vmem:[#allocation4 + $0x48] sm:$0xff]  ;;  %v1814_v34 = vmul.f32 %v4905_v42, %v1622_v12 }
 0x3b9   : > { %2208 = vst [vmem:[#allocation4] sm:$0xff] %v2176_v41  ;;  %v2177_v46 = vadd.f32 %v1971_v26, %v1807_v44  ;;  %v3314_v52 = vpop.f32.mrb[16].mxu1  ;;  %v1817_v44 = vmul.f32 %v5245_v29, %v1625_v60 }
 0x3ba   : > { %2211 = vst [vmem:[#allocation4 + $0x18] sm:$0xff] %v2179_v4  ;;  %v2194_v13 = vadd.f32 %v3314_v52, %v1824_v3  ;;  %v2113_v32 = vpop.f32.mrb[17].mxu1  ;;  %v5246_v3 = vld [vmem:[#allocation34_spill] sm:$0xff]  ;;  %v5247_v52 = vld [vmem:[#allocation37_spill] sm:$0xff] }
 0x3bb   : > { %2209 = vst [vmem:[#allocation4 + $0x8] sm:$0xff] %v2177_v46  ;;  %v2192_v47 = vadd.f32 %v2113_v32, %v1822_v62  ;;  %v3315_v7 = vpop.f32.mrb[18].mxu1  ;;  %v1815_v4 = vmul.f32 %v5246_v3, %v1623_v51  ;;  %v1639_v46 = vld [vmem:[#allocation4 + $0xc8] sm:$0xff]  ;;  %v2276_v3 = vld [vmem:[#allocation3] sm:$0xff] (!%p2967_p9) }
 0x3bc   : > { %2226 = vst [vmem:[#allocation4 + $0x90] sm:$0xff] %v2194_v13  ;;  %v2195_v24 = vadd.f32 %v3315_v7, %v1825_v45  ;;  %v2116_v31 = vpop.f32.mrb[19].mxu1  ;;  %v1832_v45 = vmul.f32 %v5247_v52, %v1640_v1  ;;  %v5248_v32 = vld [vmem:[#allocation39_spill] sm:$0xff]  ;;  %v5249_v7 = vld [vmem:[#allocation69_spill] sm:$0xff]  ;;  %v1831_v35 = vmul.f32 %v5250_v21, %v1639_v46  ;;  %v2280_v52 = vld [vmem:[#allocation3 + $0x20] sm:$0xff] (!%p2967_p9) }
 0x3bd   : > { %2224 = vst [vmem:[#allocation4 + $0x80] sm:$0xff] %v2192_v47  ;;  %v2193_v54 = vadd.f32 %v2116_v31, %v1823_v58  ;;  %v1830_v58 = vmul.f32 %v5248_v32, %v1638_v53  ;;  %v2281_v46 = vld [vmem:[#allocation3 + $0x28] sm:$0xff] (!%p2967_p9) }
 0x3be   : > { %2227 = vst [vmem:[#allocation4 + $0x98] sm:$0xff] %v2195_v24  ;;  %v1833_v24 = vmul.f32 %v5249_v7, %v1641_v8  ;;  %v2278_v8 = vld [vmem:[#allocation3 + $0x10] sm:$0xff] (!%p2967_p9) }
 0x3bf   : > { %2225 = vst [vmem:[#allocation4 + $0x88] sm:$0xff] %v2193_v54  ;;  %3665 = vrcp.f32 (!%p2967_p9), %v2278_v8 }
 0x3c0   : > { %3667 = vrcp.f32 (!%p2967_p9), %v2276_v3 }
 0x3c9   : > { %v3286_v18 = vpop.f32.mrb[20].mxu0 }
 0x3ca   : > { %v2182_v48 = vadd.f32 %v3286_v18, %v1812_v17  ;;  %v1984_v40 = vpop.f32.mrb[21].mxu0 }
 0x3cb   : > { %v2180_v19 = vadd.f32 %v1984_v40, %v1810_v59  ;;  %v3287_v56 = vpop.f32.mrb[22].mxu0  ;;  %v5251_v40 = vld [vmem:[#allocation40_spill] sm:$0xff] }
 0x3cc   : > { %2214 = vst [vmem:[#allocation4 + $0x30] sm:$0xff] %v2182_v48  ;;  %v2183_v6 = vadd.f32 %v3287_v56, %v1813_v9  ;;  %v1987_v38 = vpop.f32.mrb[23].mxu0  ;;  %v1626_v9 = vld [vmem:[#allocation4 + $0x60] sm:$0xff]  ;;  %v1627_v48 = vld [vmem:[#allocation4 + $0x68] sm:$0xff]  ;;  %v5252_v56 = vld [vmem:[#allocation36_spill] sm:$0xff] }
 0x3cd   : > { %2212 = vst [vmem:[#allocation4 + $0x20] sm:$0xff] %v2180_v19  ;;  %v2181_v5 = vadd.f32 %v1987_v38, %v1811_v37  ;;  %v3318_v25 = vpop.f32.mrb[20].mxu1  ;;  %v1820_v37 = vmul.f32 %v5251_v40, %v1628_v55  ;;  %v1818_v0 = vmul.f32 %v4916_v30, %v1626_v9  ;;  %v1821_v49 = vmul.f32 %v5252_v56, %v1629_v39  ;;  %v5253_v38 = vld [vmem:[#allocation38_spill] sm:$0xff]  ;;  %v1643_v30 = vld [vmem:[#allocation4 + $0xe8] sm:$0xff]  ;;  %v2294_v56 = vld [vmem:[#allocation3 + $0x90] sm:$0xff] (!%p2967_p9) }
 0x3ce   : > { %2215 = vst [vmem:[#allocation4 + $0x38] sm:$0xff] %v2183_v6  ;;  %v2198_v16 = vadd.f32 %v3318_v25, %v1828_v33  ;;  %v2129_v43 = vpop.f32.mrb[21].mxu1  ;;  %v1799_v25 = vpop.permute.xlu1 %1798  ;;  %v2293_v39 = vld [vmem:[#allocation3 + $0x88] sm:$0xff] (!%p2967_p9)  ;;  %v2292_v40 = vld [vmem:[#allocation3 + $0x80] sm:$0xff] (!%p2967_p9) }
 0x3cf   : > { %2213 = vst [vmem:[#allocation4 + $0x28] sm:$0xff] %v2181_v5  ;;  %v2196_v27 = vadd.f32 %v2129_v43, %v1826_v61  ;;  %v3319_v28 = vpop.f32.mrb[22].mxu1  ;;  %v1819_v61 = vmul.f32 %v5253_v38, %v1627_v48  ;;  %v1644_v5 = vld [vmem:[#allocation4 + $0xf0] sm:$0xff]  ;;  %v1642_v43 = vld [vmem:[#allocation4 + $0xe0] sm:$0xff] }
 0x3d0   : > { %2230 = vst [vmem:[#allocation4 + $0xb0] sm:$0xff] %v2198_v16  ;;  %v2199_v22 = vadd.f32 %v3319_v28, %v1829_v63  ;;  %v2132_v36 = vpop.f32.mrb[23].mxu1  ;;  %v1645_v28 = vld [vmem:[#allocation4 + $0xf8] sm:$0xff]  ;;  %v1834_v12 = vmul.f32 %v5254_v23, %v1642_v43  ;;  %v2296_v38 = vld [vmem:[#allocation3 + $0xa0] sm:$0xff] (!%p2967_p9)  ;;  %v2301_v43 = vld [vmem:[#allocation3 + $0xc8] sm:$0xff] (!%p2967_p9) }
 0x3d1   : > { %2228 = vst [vmem:[#allocation4 + $0xa0] sm:$0xff] %v2196_v27  ;;  %v2197_v2 = vadd.f32 %v2132_v36, %v1827_v11  ;;  %v2305_v23 = vld [vmem:[#allocation3 + $0xe8] sm:$0xff] (!%p2967_p9) }
 0x3d2   : > { %2231 = vst [vmem:[#allocation4 + $0xb8] sm:$0xff] %v2199_v22  ;;  %v1804_v22 = vpop.permute.xlu0 %1803 }
 0x3d3   : > { %2229 = vst [vmem:[#allocation4 + $0xa8] sm:$0xff] %v2197_v2  ;;  %v1836_v2 = vmul.f32 %v1799_v25, %v1644_v5  ;;  %v1837_v51 = vmul.f32 %v1804_v22, %v1645_v28  ;;  %v2299_v5 = vld [vmem:[#allocation3 + $0xb8] sm:$0xff] (!%p2967_p9) }
 0x3d4   : > { %v2303_v22 = vld [vmem:[#allocation3 + $0xd8] sm:$0xff] (!%p2967_p9) }
 0x3d9   : > { %v3290_v57 = vpop.f32.mrb[24].mxu0 }
 0x3da   : > { %v2186_v41 = vadd.f32 %v3290_v57, %v1816_v50  ;;  %v2000_v14 = vpop.f32.mrb[25].mxu0 }
 0x3db   : > { %v2184_v26 = vadd.f32 %v2000_v14, %v1814_v34  ;;  %v3291_v62 = vpop.f32.mrb[26].mxu0  ;;  %v5255_v34 = vld [vmem:[#allocation41_spill] sm:$0xff] }
 0x3dc   : > { %2218 = vst [vmem:[#allocation4 + $0x50] sm:$0xff] %v2186_v41  ;;  %v2187_v13 = vadd.f32 %v3291_v62, %v1817_v44  ;;  %v2003_v20 = vpop.f32.mrb[27].mxu0  ;;  %v1835_v57 = vmul.f32 %v5255_v34, %v1643_v30  ;;  %v2277_v62 = vld [vmem:[#allocation3 + $0x8] sm:$0xff] (!%p2967_p9)  ;;  %v2302_v30 = vld [vmem:[#allocation3 + $0xd0] sm:$0xff] (!%p2967_p9) }
 0x3dd   : > { %2216 = vst [vmem:[#allocation4 + $0x40] sm:$0xff] %v2184_v26  ;;  %v2185_v42 = vadd.f32 %v2003_v20, %v1815_v4  ;;  %v3322_v47 = vpop.f32.mrb[24].mxu1  ;;  %v2279_v4 = vld [vmem:[#allocation3 + $0x18] sm:$0xff] (!%p2967_p9)  ;;  %v3850_v26 = vmov (!%p2967_p9), 0   ;;  %v3666_v20 = vpop.eup (!%p2967_p9), %3665  ;;  %v2306_v34 = vld [vmem:[#allocation3 + $0xf0] sm:$0xff] (!%p2967_p9) }
 0x3de   : > { %2219 = vst [vmem:[#allocation4 + $0x58] sm:$0xff] %v2187_v13  ;;  %v2202_v31 = vadd.f32 %v3322_v47, %v1832_v45  ;;  %v2145_v54 = vpop.f32.mrb[25].mxu1  ;;  %3664 = vset.pattern.permute.xlu1 (!%p2967_p9), %v3850_v26  ;;  %3663 = vset.pattern.permute.xlu0 (!%p2967_p9), %v3850_v26  ;;  %3669 = vrcp.f32 (!%p2967_p9), %v2279_v4  ;;  %v2283_v45 = vld [vmem:[#allocation3 + $0x38] sm:$0xff] (!%p2967_p9)  ;;  %v2282_v13 = vld [vmem:[#allocation3 + $0x30] sm:$0xff] (!%p2967_p9)  ;;  %v3668_v32 = vpop.eup (!%p2967_p9), %3667  ;;  %v2284_v47 = vld [vmem:[#allocation3 + $0x40] sm:$0xff] (!%p2967_p9) }
 0x3df   : > { %2217 = vst [vmem:[#allocation4 + $0x48] sm:$0xff] %v2185_v42  ;;  %v2200_v15 = vadd.f32 %v2145_v54, %v1830_v58  ;;  %v3323_v10 = vpop.f32.mrb[26].mxu1  ;;  %3671 = vrcp.f32 (!%p2967_p9), %v2277_v62  ;;  %2384 = vperm.xlu1 (!%p2967_p9), %3664, %v3666_v20   ;;  %v2285_v58 = vld [vmem:[#allocation3 + $0x48] sm:$0xff] (!%p2967_p9)  ;;  %2374 = vperm.xlu0 (!%p2967_p9), %3663, %v3668_v32   ;;  %v2286_v54 = vld [vmem:[#allocation3 + $0x50] sm:$0xff] (!%p2967_p9)  ;;  %v2343_v62 = vld [vmem:[#allocation4 + $0x18] sm:$0xff] (!%p2967_p9) }
 0x3e0   : > { %2234 = vst [vmem:[#allocation4 + $0xd0] sm:$0xff] %v2202_v31  ;;  %v2203_v17 = vadd.f32 %v3323_v10, %v1833_v24  ;;  %v2148_v59 = vpop.f32.mrb[27].mxu1  ;;  %3673 = vrcp.f32 (!%p2967_p9), %v2281_v46  ;;  %v2287_v24 = vld [vmem:[#allocation3 + $0x58] sm:$0xff] (!%p2967_p9)  ;;  %v2288_v10 = vld [vmem:[#allocation3 + $0x60] sm:$0xff] (!%p2967_p9)  ;;  %v2342_v26 = vld [vmem:[#allocation4 + $0x10] sm:$0xff] (!%p2967_p9) }
 0x3e1   : > { %2232 = vst [vmem:[#allocation4 + $0xc0] sm:$0xff] %v2200_v15  ;;  %v2201_v18 = vadd.f32 %v2148_v59, %v1831_v35  ;;  %3675 = vrcp.f32 (!%p2967_p9), %v2280_v52  ;;  %v2289_v35 = vld [vmem:[#allocation3 + $0x68] sm:$0xff] (!%p2967_p9)  ;;  %v2291_v59 = vld [vmem:[#allocation3 + $0x78] sm:$0xff] (!%p2967_p9)  ;;  %v2340_v46 = vld [vmem:[#allocation4] sm:$0xff] (!%p2967_p9) }
 0x3e2   : > { %2235 = vst [vmem:[#allocation4 + $0xd8] sm:$0xff] %v2203_v17  ;;  %3677 = vrcp.f32 (!%p2967_p9), %v2283_v45  ;;  %v2341_v52 = vld [vmem:[#allocation4 + $0x8] sm:$0xff] (!%p2967_p9) }
 0x3e3   : > { %2233 = vst [vmem:[#allocation4 + $0xc8] sm:$0xff] %v2201_v18  ;;  %3679 = vrcp.f32 (!%p2967_p9), %v2282_v13  ;;  %v2290_v18 = vld [vmem:[#allocation3 + $0x70] sm:$0xff] (!%p2967_p9) }
 0x3e4   : > { %3681 = vrcp.f32 (!%p2967_p9), %v2285_v58 }
 0x3e5   : > { %v3294_v19 = vpop.f32.mrb[28].mxu0  ;;  %3683 = vrcp.f32 (!%p2967_p9), %v2284_v47  ;;  %v2345_v47 = vld [vmem:[#allocation4 + $0x28] sm:$0xff] (!%p2967_p9) }
 0x3e6   : > { %v2190_v33 = vadd.f32 %v3294_v19, %v1820_v37  ;;  %v2016_v6 = vpop.f32.mrb[29].mxu0  ;;  %3685 = vrcp.f32 (!%p2967_p9), %v2287_v24  ;;  %v2344_v24 = vld [vmem:[#allocation4 + $0x20] sm:$0xff] (!%p2967_p9) }
 0x3e7   : > { %v2188_v63 = vadd.f32 %v2016_v6, %v1818_v0  ;;  %v3295_v16 = vpop.f32.mrb[30].mxu0  ;;  %3687 = vrcp.f32 (!%p2967_p9), %v2286_v54  ;;  %v2295_v0 = vld [vmem:[#allocation3 + $0x98] sm:$0xff] (!%p2967_p9) }
 0x3e8   : > { %2222 = vst [vmem:[#allocation4 + $0x70] sm:$0xff] %v2190_v33  ;;  %v2191_v11 = vadd.f32 %v3295_v16, %v1821_v49  ;;  %v2019_v27 = vpop.f32.mrb[31].mxu0  ;;  %v3670_v42 = vpop.eup (!%p2967_p9), %3669  ;;  %3689 = vrcp.f32 (!%p2967_p9), %v2289_v35  ;;  %v2297_v33 = vld [vmem:[#allocation3 + $0xa8] sm:$0xff] (!%p2967_p9) }
 0x3e9   : > { %2220 = vst [vmem:[#allocation4 + $0x60] sm:$0xff] %v2188_v63  ;;  %v2189_v36 = vadd.f32 %v2019_v27, %v1819_v61  ;;  %v3672_v7 = vpop.eup (!%p2967_p9), %3671  ;;  %2389 = vperm.xlu1 (!%p2967_p9), %3664, %v3670_v42   ;;  %3691 = vrcp.f32 (!%p2967_p9), %v2288_v10  ;;  %v2298_v63 = vld [vmem:[#allocation3 + $0xb0] sm:$0xff] (!%p2967_p9)  ;;  %v2300_v27 = vld [vmem:[#allocation3 + $0xc0] sm:$0xff] (!%p2967_p9)  ;;  %v2347_v10 = vld [vmem:[#allocation4 + $0x38] sm:$0xff] (!%p2967_p9) }
 0x3ea   : > { %2223 = vst [vmem:[#allocation4 + $0x78] sm:$0xff] %v2191_v11  ;;  %v3674_v31 = vpop.eup (!%p2967_p9), %3673  ;;  %2379 = vperm.xlu0 (!%p2967_p9), %3663, %v3672_v7   ;;  %3693 = vrcp.f32 (!%p2967_p9), %v2291_v59 }
 0x3eb   : > { %2221 = vst [vmem:[#allocation4 + $0x68] sm:$0xff] %v2189_v36  ;;  %v3676_v21 = vpop.eup (!%p2967_p9), %3675  ;;  %3695 = vrcp.f32 (!%p2967_p9), %v2290_v18 }
 0x3ec   : > { %v3326_v60 = vpop.f32.mrb[28].mxu1  ;;  %2275 = sbr.rel (%p2967_p9) target bundleno = 1191 (0x4a7), region = 52  ;;  %v3678_v15 = vpop.eup (!%p2967_p9), %3677  ;;  %3697 = vrcp.f32 (!%p2967_p9), %v2293_v39 }
 0x3ed   : > { %v2206_v50 = vadd.f32 %v3326_v60, %v1836_v2  ;;  %v2161_v1 = vpop.f32.mrb[29].mxu1  ;;  %2399 = vperm.xlu1 (!%p2967_p9), %3664, %v3674_v31   ;;  %v3680_v17 = vpop.eup (!%p2967_p9), %3679  ;;  %3699 = vrcp.f32 (!%p2967_p9), %v2292_v40  ;;  %v2304_v60 = vld [vmem:[#allocation3 + $0xe0] sm:$0xff] (!%p2967_p9) }
 0x3ee   : > { %v2204_v29 = vadd.f32 %v2161_v1, %v1834_v12  ;;  %v3327_v44 = vpop.f32.mrb[30].mxu1  ;;  %2394 = vperm.xlu0 (!%p2967_p9), %3663, %v3676_v21   ;;  %v3682_v55 = vpop.eup (!%p2967_p9), %3681  ;;  %3701 = vrcp.f32 (!%p2967_p9), %v2295_v0  ;;  %v2348_v40 = vld [vmem:[#allocation4 + $0x40] sm:$0xff] (!%p2967_p9) }
 0x3ef   : > { %2238 = vst [vmem:[#allocation4 + $0xf0] sm:$0xff] %v2206_v50  ;;  %v2207_v53 = vadd.f32 %v3327_v44, %v1837_v51  ;;  %v2164_v41 = vpop.f32.mrb[31].mxu1  ;;  %v3684_v9 = vpop.eup (!%p2967_p9), %3683  ;;  %3703 = vrcp.f32 (!%p2967_p9), %v2294_v56  ;;  %v2307_v50 = vld [vmem:[#allocation3 + $0xf8] sm:$0xff] (!%p2967_p9) }
 0x3f0   : > { %2236 = vst [vmem:[#allocation4 + $0xe0] sm:$0xff] %v2204_v29  ;;  %v2205_v14 = vadd.f32 %v2164_v41, %v1835_v57  ;;  %v3686_v48 = vpop.eup (!%p2967_p9), %3685  ;;  %3705 = vrcp.f32 (!%p2967_p9), %v2297_v33  ;;  %v2351_v33 = vld [vmem:[#allocation4 + $0x58] sm:$0xff] (!%p2967_p9) }
 0x3f1   : > { %2239 = vst [vmem:[#allocation4 + $0xf8] sm:$0xff] %v2207_v53  ;;  %2409 = vperm.xlu1 (!%p2967_p9), %3664, %v3678_v15   ;;  %v3688_v37 = vpop.eup (!%p2967_p9), %3687  ;;  %3707 = vrcp.f32 (!%p2967_p9), %v2296_v38 }
 0x3f2   : > { %2237 = vst [vmem:[#allocation4 + $0xe8] sm:$0xff] %v2205_v14  ;;  %2404 = vperm.xlu0 (!%p2967_p9), %3663, %v3680_v17   ;;  %v3690_v19 = vpop.eup (!%p2967_p9), %3689  ;;  %3709 = vrcp.f32 (!%p2967_p9), %v2299_v5  ;;  %v2346_v17 = vld [vmem:[#allocation4 + $0x30] sm:$0xff] (!%p2967_p9) }
 0x3f3   : > { %v3692_v49 = vpop.eup %3691  ;;  %3711 = vrcp.f32 %v2298_v63 }
 0x3f4   : > { %v3694_v6 = vpop.eup %3693  ;;  %3713 = vrcp.f32 %v2301_v43  ;;  %v2352_v43 = vld [vmem:[#allocation4 + $0x60] sm:$0xff] }
 0x3f5   : > { %2419 = vperm.xlu1 %3664, %v3682_v55   ;;  %v3696_v61 = vpop.eup %3695  ;;  %3715 = vrcp.f32 %v2300_v27 }
 0x3f6   : > { %2414 = vperm.xlu0 %3663, %v3684_v9   ;;  %v3698_v25 = vpop.eup %3697  ;;  %3717 = vrcp.f32 %v2303_v22 }
 0x3f7   : > { %v3700_v16 = vpop.eup %3699  ;;  %3719 = vrcp.f32 %v2302_v30  ;;  %v2355_v30 = vld [vmem:[#allocation4 + $0x78] sm:$0xff] }
 0x3f8   : > { %v3702_v11 = vpop.eup %3701  ;;  %3721 = vrcp.f32 %v2305_v23 }
 0x3f9   : > { %2429 = vperm.xlu1 %3664, %v3686_v48   ;;  %v3704_v28 = vpop.eup %3703  ;;  %3723 = vrcp.f32 %v2304_v60  ;;  %v2349_v48 = vld [vmem:[#allocation4 + $0x48] sm:$0xff] }
 0x3fa   : > { %2424 = vperm.xlu0 %3663, %v3688_v37   ;;  %v3706_v36 = vpop.eup %3705  ;;  %3725 = vrcp.f32 %v2307_v50 }
 0x3fb   : > { %v3708_v2 = vpop.eup %3707  ;;  %3727 = vrcp.f32 %v2306_v34  ;;  %v2356_v34 = vld [vmem:[#allocation4 + $0x80] sm:$0xff] }
 0x3fc   : > { %v3710_v12 = vpop.eup %3709 }
 0x3fd   : > { %2439 = vperm.xlu1 %3664, %v3690_v19   ;;  %v3712_v51 = vpop.eup %3711 }
 0x3fe   : > { %2434 = vperm.xlu0 %3663, %v3692_v49   ;;  %v3714_v1 = vpop.eup %3713 }
 0x3ff   : > { %v3716_v57 = vpop.eup %3715 }
 0x400   : > { %v3718_v29 = vpop.eup %3717 }
 0x401   : > { %2449 = vperm.xlu1 %3664, %v3694_v6   ;;  %v3720_v44 = vpop.eup %3719  ;;  %v2350_v6 = vld [vmem:[#allocation4 + $0x50] sm:$0xff] }
 0x402   : > { %2444 = vperm.xlu0 %3663, %v3696_v61   ;;  %v3722_v53 = vpop.eup %3721 }
 0x403   : > { %v3724_v41 = vpop.eup %3723 }
 0x404   : > { %v3726_v14 = vpop.eup %3725 }
 0x405   : > { %2459 = vperm.xlu1 %3664, %v3698_v25   ;;  %v3728_v8 = vpop.eup %3727 }
 0x406   : > { %2454 = vperm.xlu0 %3663, %v3700_v16   ;;  %v2353_v16 = vld [vmem:[#allocation4 + $0x68] sm:$0xff] }
 0x409   : > { %2469 = vperm.xlu1 %3664, %v3702_v11  }
 0x40a   : > { %2464 = vperm.xlu0 %3663, %v3704_v28  }
 0x40d   : > { %2479 = vperm.xlu1 %3664, %v3706_v36  }
 0x40e   : > { %2474 = vperm.xlu0 %3663, %v3708_v2   ;;  %v2354_v2 = vld [vmem:[#allocation4 + $0x70] sm:$0xff] }
 0x411   : > { %2489 = vperm.xlu1 %3664, %v3710_v12  }
 0x412   : > { %2484 = vperm.xlu0 %3663, %v3712_v51  }
 0x415   : > { %2499 = vperm.xlu1 %3664, %v3714_v1   ;;  %v2357_v1 = vld [vmem:[#allocation4 + $0x88] sm:$0xff] }
 0x416   : > { %2494 = vperm.xlu0 %3663, %v3716_v57  }
 0x419   : > { %2509 = vperm.xlu1 %3664, %v3718_v29  }
 0x41a   : > { %2504 = vperm.xlu0 %3663, %v3720_v44  }
 0x41d   : > { %2519 = vperm.xlu1 %3664, %v3722_v53  }
 0x41e   : > { %2514 = vperm.xlu0 %3663, %v3724_v41  }
 0x421   : > { %2529 = vperm.xlu1 %3664, %v3726_v14   ;;  %v2359_v14 = vld [vmem:[#allocation4 + $0x98] sm:$0xff] }
 0x422   : > { %2524 = vperm.xlu0 %3663, %v3728_v8   ;;  %v2358_v8 = vld [vmem:[#allocation4 + $0x90] sm:$0xff] }
 0x45e   : > { %v2385_v3 = vpop.permute.xlu1 %2384  ;;  %v2375_v4 = vpop.permute.xlu0 %2374 }
 0x45f   : > { %v2534_v13 = vmul.f32 %v2385_v3, %v2342_v26  ;;  %v2532_v58 = vmul.f32 %v2375_v4, %v2340_v46 }
 0x468   : > { %v2390_v45 = vpop.permute.xlu1 %2389 }
 0x469   : > { %v2535_v20 = vmul.f32 %v2390_v45, %v2343_v62  ;;  %v2380_v32 = vpop.permute.xlu0 %2379  ;;  %v2360_v45 = vld [vmem:[#allocation4 + $0xa0] sm:$0xff] }
 0x46a   : > { %v2533_v42 = vmul.f32 %v2380_v32, %v2341_v52  ;;  %v2361_v52 = vld [vmem:[#allocation4 + $0xa8] sm:$0xff] }
 0x46b   : > { %v3049_v7 = vpack.c.bf16 %v2535_v20, %v2534_v13 }
 0x46c   : > { %v3044_v31 = vpack.c.bf16 %v2533_v42, %v2532_v58  ;;  %v2400_v54 = vpop.permute.xlu1 %2399 }
 0x46d   : > { %3121 = vst [vmem:[%s4097_s5 + $0x8] sm:$0xff] %v3049_v7   ;;  %v2537_v21 = vmul.f32 %v2400_v54, %v2345_v47  ;;  %v2395_v35 = vpop.permute.xlu0 %2394  ;;  %v2363_v47 = vld [vmem:[#allocation4 + $0xb8] sm:$0xff]  ;;  %v2362_v7 = vld [vmem:[#allocation4 + $0xb0] sm:$0xff] }
 0x46e   : > { %3045 = vst [vmem:[%s4097_s5] sm:$0xff] %v3044_v31   ;;  %v2536_v15 = vmul.f32 %v2395_v35, %v2344_v24 }
 0x470   : > { %v3054_v59 = vpack.c.bf16 %v2537_v21, %v2536_v15  ;;  %v2410_v55 = vpop.permute.xlu1 %2409  ;;  %v2365_v15 = vld [vmem:[#allocation4 + $0xc8] sm:$0xff] }
 0x471   : > { %v2539_v18 = vmul.f32 %v2410_v55, %v2347_v10  ;;  %v2405_v9 = vpop.permute.xlu0 %2404  ;;  %v2364_v10 = vld [vmem:[#allocation4 + $0xc0] sm:$0xff] }
 0x472   : > { %3122 = vst [vmem:[%s4097_s5 + $0x10] sm:$0xff] %v3054_v59   ;;  %v2538_v39 = vmul.f32 %v2405_v9, %v2346_v17 }
 0x474   : > { %v3059_v37 = vpack.c.bf16 %v2539_v18, %v2538_v39  ;;  %v2420_v0 = vpop.permute.xlu1 %2419  ;;  %v2367_v39 = vld [vmem:[#allocation4 + $0xd8] sm:$0xff] }
 0x475   : > { %v2541_v19 = vmul.f32 %v2420_v0, %v2349_v48  ;;  %v2415_v56 = vpop.permute.xlu0 %2414  ;;  %v2366_v48 = vld [vmem:[#allocation4 + $0xd0] sm:$0xff] }
 0x476   : > { %3123 = vst [vmem:[%s4097_s5 + $0x18] sm:$0xff] %v3059_v37   ;;  %v2540_v49 = vmul.f32 %v2415_v56, %v2348_v40 }
 0x478   : > { %v3064_v38 = vpack.c.bf16 %v2541_v19, %v2540_v49  ;;  %v2430_v61 = vpop.permute.xlu1 %2429  ;;  %v2369_v49 = vld [vmem:[#allocation4 + $0xe8] sm:$0xff] }
 0x479   : > { %v2543_v5 = vmul.f32 %v2430_v61, %v2351_v33  ;;  %v2425_v25 = vpop.permute.xlu0 %2424  ;;  %v2368_v33 = vld [vmem:[#allocation4 + $0xe0] sm:$0xff] }
 0x47a   : > { %3124 = vst [vmem:[%s4097_s5 + $0x20] sm:$0xff] %v3064_v38   ;;  %v2542_v63 = vmul.f32 %v2425_v25, %v2350_v6 }
 0x47c   : > { %v3069_v11 = vpack.c.bf16 %v2543_v5, %v2542_v63  ;;  %v2440_v27 = vpop.permute.xlu1 %2439  ;;  %v2371_v63 = vld [vmem:[#allocation4 + $0xf8] sm:$0xff] }
 0x47d   : > { %v2545_v28 = vmul.f32 %v2440_v27, %v2353_v16  ;;  %v2435_v22 = vpop.permute.xlu0 %2434  ;;  %v2370_v16 = vld [vmem:[#allocation4 + $0xf0] sm:$0xff] }
 0x47e   : > { %3125 = vst [vmem:[%s4097_s5 + $0x28] sm:$0xff] %v3069_v11   ;;  %v2544_v36 = vmul.f32 %v2435_v22, %v2352_v43 }
 0x480   : > { %v3074_v23 = vpack.c.bf16 %v2545_v28, %v2544_v36  ;;  %v2450_v12 = vpop.permute.xlu1 %2449 }
 0x481   : > { %v2547_v60 = vmul.f32 %v2450_v12, %v2355_v30  ;;  %v2445_v51 = vpop.permute.xlu0 %2444 }
 0x482   : > { %3126 = vst [vmem:[%s4097_s5 + $0x30] sm:$0xff] %v3074_v23   ;;  %v2546_v50 = vmul.f32 %v2445_v51, %v2354_v2 }
 0x484   : > { %v3079_v57 = vpack.c.bf16 %v2547_v60, %v2546_v50  ;;  %v2460_v29 = vpop.permute.xlu1 %2459 }
 0x485   : > { %v2549_v44 = vmul.f32 %v2460_v29, %v2357_v1  ;;  %v2455_v53 = vpop.permute.xlu0 %2454 }
 0x486   : > { %3127 = vst [vmem:[%s4097_s5 + $0x38] sm:$0xff] %v3079_v57   ;;  %v2548_v41 = vmul.f32 %v2455_v53, %v2356_v34 }
 0x488   : > { %v3084_v3 = vpack.c.bf16 %v2549_v44, %v2548_v41  ;;  %v2470_v4 = vpop.permute.xlu1 %2469 }
 0x489   : > { %v2551_v26 = vmul.f32 %v2470_v4, %v2359_v14  ;;  %v2465_v62 = vpop.permute.xlu0 %2464 }
 0x48a   : > { %3128 = vst [vmem:[%s4097_s5 + $0x40] sm:$0xff] %v3084_v3   ;;  %v2550_v46 = vmul.f32 %v2465_v62, %v2358_v8 }
 0x48c   : > { %v3089_v13 = vpack.c.bf16 %v2551_v26, %v2550_v46  ;;  %v2480_v20 = vpop.permute.xlu1 %2479 }
 0x48d   : > { %v2553_v32 = vmul.f32 %v2480_v20, %v2361_v52  ;;  %v2475_v58 = vpop.permute.xlu0 %2474 }
 0x48e   : > { %3129 = vst [vmem:[%s4097_s5 + $0x48] sm:$0xff] %v3089_v13   ;;  %v2552_v42 = vmul.f32 %v2475_v58, %v2360_v45 }
 0x490   : > { %v3094_v24 = vpack.c.bf16 %v2553_v32, %v2552_v42  ;;  %v2490_v31 = vpop.permute.xlu1 %2489 }
 0x491   : > { %v2555_v54 = vmul.f32 %v2490_v31, %v2363_v47  ;;  %v2485_v21 = vpop.permute.xlu0 %2484 }
 0x492   : > { %3130 = vst [vmem:[%s4097_s5 + $0x50] sm:$0xff] %v3094_v24   ;;  %v2554_v35 = vmul.f32 %v2485_v21, %v2362_v7 }
 0x494   : > { %v3099_v17 = vpack.c.bf16 %v2555_v54, %v2554_v35  ;;  %v2500_v59 = vpop.permute.xlu1 %2499 }
 0x495   : > { %v2557_v55 = vmul.f32 %v2500_v59, %v2365_v15  ;;  %v2495_v18 = vpop.permute.xlu0 %2494 }
 0x496   : > { %3131 = vst [vmem:[%s4097_s5 + $0x58] sm:$0xff] %v3099_v17   ;;  %v2556_v9 = vmul.f32 %v2495_v18, %v2364_v10 }
 0x498   : > { %v3104_v40 = vpack.c.bf16 %v2557_v55, %v2556_v9  ;;  %v2510_v37 = vpop.permute.xlu1 %2509 }
 0x499   : > { %v2559_v0 = vmul.f32 %v2510_v37, %v2367_v39  ;;  %v2505_v19 = vpop.permute.xlu0 %2504 }
 0x49a   : > { %3132 = vst [vmem:[%s4097_s5 + $0x60] sm:$0xff] %v3104_v40   ;;  %v2558_v56 = vmul.f32 %v2505_v19, %v2366_v48 }
 0x49c   : > { %v3109_v6 = vpack.c.bf16 %v2559_v0, %v2558_v56  ;;  %v2520_v38 = vpop.permute.xlu1 %2519 }
 0x49d   : > { %v2561_v61 = vmul.f32 %v2520_v38, %v2369_v49  ;;  %v2515_v5 = vpop.permute.xlu0 %2514 }
 0x49e   : > { %3133 = vst [vmem:[%s4097_s5 + $0x68] sm:$0xff] %v3109_v6   ;;  %v2560_v25 = vmul.f32 %v2515_v5, %v2368_v33 }
 0x4a0   : > { %v3114_v43 = vpack.c.bf16 %v2561_v61, %v2560_v25  ;;  %v2530_v11 = vpop.permute.xlu1 %2529 }
 0x4a1   : > { %v2563_v27 = vmul.f32 %v2530_v11, %v2371_v63  ;;  %v2525_v28 = vpop.permute.xlu0 %2524 }
 0x4a2   : > { %3134 = vst [vmem:[%s4097_s5 + $0x70] sm:$0xff] %v3114_v43   ;;  %v2562_v22 = vmul.f32 %v2525_v28, %v2370_v16 }
 0x4a4   : > { %v3119_v36 = vpack.c.bf16 %v2563_v27, %v2562_v22 }
 0x4a6   : > { %3135 = vst [vmem:[%s4097_s5 + $0x78] sm:$0xff] %v3119_v36  }
 0x4a7 PF: > { %s2725_s18 = scalar_lea.sflag [#allocation7], %s4077_s25 }
 0x4a8   : > { %s3040_s23 = sshll.u32 %s3815_s19, 10  ;;  %s2754_s4 = sshll.u32 %s4097_s5, 4  ;;  %s2755_s4 = int_to_ptr.vmem [resolvable:$true] %s2754_s4 }
 0x4a9   : > { %s2737_s6 = scalar_lea.hbm %s5090_s3, %s3040_s23  ;;  %s3851_s15 = smov 1024  }
 0x4aa   : > { %3355 = sst [smem:[#allocation19]] (%p4000_p4), %s3851_s15  ;;  %s3852_s7 = smov 2048  }
 0x4ab   : > { %3356 = sst [smem:[#allocation19 + $0x1]] (%p4000_p4), %s3852_s7  ;;  %s3853_s27 = smov 16  }
 0x4ac   : > { %3357 = sst [smem:[#allocation19 + $0x2]] (%p4000_p4), %s3853_s27  ;;  %s3854_s25 = smov 64  }
 0x4ad   : > { %3358 = sst [smem:[#allocation19 + $0x3]] (%p4000_p4), %s3854_s25  ;;  %s3855_s19 = smov 4  }
 0x4ae   : > { %3359 = sst [smem:[#allocation19 + $0x4]] (%p4000_p4), %s3854_s25  ;;  %s3856_s24 = smov [#allocation18]  }
 0x4af   : > { %3360 = sst [smem:[#allocation19 + $0x5]] (%p4000_p4), %s3855_s19  ;;  %s3857_s29 = smov 0  }
 0x4b0   : > { %3361 = dma.general (%p4000_p4), %s2755_s4, 2048, %s2737_s6, %s2725_s18, %s3856_s24, [#allocation19], %s3857_s29, 0  }
 0x4b1 PF: > { %s5256_s21 = sld [smem:[#allocation26_spill]]  ;;  %p3367_p11 = scmp.ge.s32.totalorder %s3827_s22, 2 }
 0x4b3   : > { %p3364_p12 = pnand %p3367_p11, %p4007_p10 }
 0x4b7   : > { %s2782_s28 = sand.u32 1, %s5256_s21  }
 0x4b8   : > { %s2783_s26 = scalar_lea.sflag [#allocation7], %s2782_s28 }
 0x4b9   : > { %3782 = dma.done.wait (!%p3364_p12), %s2783_s26, 2048  }
 0x4ba   : > { %3784 = vsyncadd (!%p3364_p12), %s2783_s26, 4294965248  ;;  %s22_s22 = sadd.s32 1, %s3827_s22   ;;  %s5258_s11 = sld [smem:[#allocation31_spill]] }
 0x4bb   : > { %p19_p13 = scmp.ge.s32.totalorder %s22_s22, 6   ;;  %s5259_s10 = sld [smem:[#allocation27_spill]] }
 0x4bc   : > { %s5260_s17 = sld [smem:[#allocation32_spill]]  ;;  %s5261_s19 = sld [smem:[#allocation28_spill]] }
 0x4bd   : > { %s5262_s5 = sld [smem:[#allocation29_spill]]  ;;  %s5263_s21 = sld [smem:[#allocation30_spill]] }
 0x4be   : > { %s5264_s12 = smov %s3791_s13  ;;  %s5265_s13 = smov %s3795_s14 }
 0x4bf   : > { %s5267_s15 = smov %s3803_s16  ;;  %s5269_s18 = smov %s3819_s20 }
 0x4c0   : > { %s5266_s14 = smov %s5258_s11  ;;  %21 = sbr.rel (!%p19_p13) target bundleno = 11 (0xb), region = 129 }
 0x4c1   : > { %s5268_s16 = smov %s5259_s10 }
 0x4c3   : > { %s5270_s20 = smov %s5262_s5 }
 0x4c7   :  { %2788 = vsyncpa [#allocation6], 1 }
 0x4c8   :  { %2790 = vsyncpa [#allocation6 + $0x1], 1 }
 0x4c9   :  { %2791 = vsyncpa [#allocation9], 1 }
 0x4ca   :  { %2793 = vsyncpa [#allocation9 + $0x1], 1 }
 0x4cb   :  { %2794 = vsyncpa [#allocation7], 1 }
 0x4cc   :  { %2796 = vsyncpa [#allocation7 + $0x1], 1 }

</bundles_post_ra>
